<compile_context>
chip_gen: v7x
topology: tpu7x:2x2x1
jax: 0.10.0
libtpu: 0.0.40
codegen_flags: <defaults>
</compile_context>

<pallas_src>
import functools
import math

import jax
import jax.numpy as jnp
from jax.experimental import pallas as pl
from jax.experimental.pallas import tpu as pltpu

_VMEM_LIMIT = 64 * 1024 * 1024   # bytes; safe on v5e/v6e (128 MiB) and v7x (64 MiB)


# ----------------------------- helpers ------------------------------------

def _round_up(x, m):
    return (x + m - 1) // m * m


def _pad_rows(x, rows):
    if x.shape[0] == rows:
        return x
    return jnp.pad(x, ((0, rows - x.shape[0]), (0, 0)))


# ----------------------------- Pallas kernels -----------------------------

def _dense_kernel(x_ref, w_ref, b_ref, o_ref, *, activation):
    # x/w arrive as bf16 MXU operands; accumulate and add bias in f32.
    y = jnp.dot(x_ref[...], w_ref[...], preferred_element_type=jnp.float32)
    y = y + b_ref[...]
    if activation == "gelu":
        # TODO(synk): reference BERT uses erf-GELU; tanh approximation kept
        # here (EUP-friendly, equivalent to the "gelu_new" variant).
        y = 0.5 * y * (1.0 + jnp.tanh(0.7978845608028654 * (y + 0.044715 * y * y * y)))
    o_ref[...] = y.astype(o_ref.dtype)


def dense(x, w, b, activation=None, tm=256):
    """y = act(x @ w + b); bf16 activations/weights in, bf16 out, f32 accum.

    M is row-tiled (padded to a tile multiple); the full [K, N] weight stays
    resident per step.  tm=256 is MXU-aligned on v6e/v7x and VMEM-safe on v7x.
    """
    M, K = x.shape
    K2, N = w.shape
    assert K == K2
    x = x.astype(jnp.bfloat16)
    w = w.astype(jnp.bfloat16)
    tm = min(tm, _round_up(M, 8))
    Mp = _round_up(M, tm)
    xp = _pad_rows(x, Mp)
    kern = functools.partial(_dense_kernel, activation=activation)
    out = pl.pallas_call(
        kern,
        out_shape=jax.ShapeDtypeStruct((Mp, N), jnp.bfloat16),
        grid=(Mp // tm,),
        in_specs=[
            pl.BlockSpec((tm, K), lambda i: (i, 0)),
            pl.BlockSpec((K, N), lambda i: (0, 0)),
            pl.BlockSpec((1, N), lambda i: (0, 0)),
        ],
        out_specs=pl.BlockSpec((tm, N), lambda i: (i, 0)),
        compiler_params=pltpu.CompilerParams(
            dimension_semantics=("parallel",),
            vmem_limit_bytes=_VMEM_LIMIT),
    )(xp, w, b.reshape(1, N).astype(jnp.float32))
    return out[:M] if Mp != M else out


def _dense_add_ln_kernel(x_ref, w_ref, b_ref, r_ref, g_ref, beta_ref, o_ref, *, eps):
    y = jnp.dot(x_ref[...], w_ref[...], preferred_element_type=jnp.float32)
    h = y + b_ref[...] + r_ref[...].astype(jnp.float32)   # residual add in f32
    mu = jnp.mean(h, axis=-1, keepdims=True)               # LN stats in f32
    var = jnp.mean((h - mu) ** 2, axis=-1, keepdims=True)
    inv = jax.lax.rsqrt(var + eps)
    o_ref[...] = ((h - mu) * inv * g_ref[...] + beta_ref[...]).astype(o_ref.dtype)


def dense_add_layernorm(x, w, b, res, gamma, beta, eps=1e-12, tm=256):
    """LayerNorm((x @ w + b) + res) fused in one kernel (no extra HBM trip)."""
    M, K = x.shape
    _, N = w.shape
    x = x.astype(jnp.bfloat16)
    w = w.astype(jnp.bfloat16)
    res = res.astype(jnp.bfloat16)
    tm = min(tm, _round_up(M, 8))
    Mp = _round_up(M, tm)
    xp = _pad_rows(x, Mp)
    rp = _pad_rows(res, Mp)
    kern = functools.partial(_dense_add_ln_kernel, eps=eps)
    out = pl.pallas_call(
        kern,
        out_shape=jax.ShapeDtypeStruct((Mp, N), jnp.bfloat16),
        grid=(Mp // tm,),
        in_specs=[
            pl.BlockSpec((tm, K), lambda i: (i, 0)),
            pl.BlockSpec((K, N), lambda i: (0, 0)),
            pl.BlockSpec((1, N), lambda i: (0, 0)),
            pl.BlockSpec((tm, N), lambda i: (i, 0)),
            pl.BlockSpec((1, N), lambda i: (0, 0)),
            pl.BlockSpec((1, N), lambda i: (0, 0)),
        ],
        out_specs=pl.BlockSpec((tm, N), lambda i: (i, 0)),
        compiler_params=pltpu.CompilerParams(
            dimension_semantics=("parallel",),
            vmem_limit_bytes=_VMEM_LIMIT),
    )(xp, w, b.reshape(1, N).astype(jnp.float32), rp,
      gamma.reshape(1, N), beta.reshape(1, N))
    return out[:M] if Mp != M else out


def _layernorm_kernel(x_ref, g_ref, b_ref, o_ref, *, eps):
    h = x_ref[...]
    mu = jnp.mean(h, axis=-1, keepdims=True)
    var = jnp.mean((h - mu) ** 2, axis=-1, keepdims=True)
    inv = jax.lax.rsqrt(var + eps)
    o_ref[...] = ((h - mu) * inv * g_ref[...] + b_ref[...]).astype(o_ref.dtype)


def layernorm(x, gamma, beta, eps=1e-12, tm=256):
    """Row-tiled LayerNorm (no residual) -- embedding path.  f32 in, bf16 out."""
    M, H = x.shape
    tm = min(tm, _round_up(M, 8))
    Mp = _round_up(M, tm)
    xp = _pad_rows(x, Mp)
    kern = functools.partial(_layernorm_kernel, eps=eps)
    out = pl.pallas_call(
        kern,
        out_shape=jax.ShapeDtypeStruct((Mp, H), jnp.bfloat16),
        grid=(Mp // tm,),
        in_specs=[
            pl.BlockSpec((tm, H), lambda i: (i, 0)),
            pl.BlockSpec((1, H), lambda i: (0, 0)),
            pl.BlockSpec((1, H), lambda i: (0, 0)),
        ],
        out_specs=pl.BlockSpec((tm, H), lambda i: (i, 0)),
        compiler_params=pltpu.CompilerParams(
            dimension_semantics=("parallel",),
            vmem_limit_bytes=_VMEM_LIMIT),
    )(xp, gamma.reshape(1, H), beta.reshape(1, H))
    return out[:M] if Mp != M else out


def _attention_kernel(qkv_ref, bias_ref, o_ref, *, nh, dh):
    # qkv_ref : (1, S, 3H) bf16   fused projection (Q | K | V along last dim;
    #                              inside each chunk, heads are contiguous)
    # bias_ref: (1, 1, S)  f32    additive attention-mask bias for this batch row
    # o_ref   : (1, S, H)  bf16   merged-head context (lane-dense HBM writeback)
    H = nh * dh
    bias = bias_ref[0]                      # [1, S], broadcasts over query rows
    for h in range(nh):                     # static unroll; nh is small
        q = qkv_ref[0, :, h * dh:(h + 1) * dh]                    # [S, dh] bf16
        k = qkv_ref[0, :, H + h * dh:H + (h + 1) * dh]
        v = qkv_ref[0, :, 2 * H + h * dh:2 * H + (h + 1) * dh]
        # NT matmul: contract last dims directly, no transposed copy of K.
        s = jax.lax.dot_general(q, k, (((1,), (1,)), ((), ())),
                                preferred_element_type=jnp.float32) + bias
        m = jnp.max(s, axis=-1, keepdims=True)
        p = jnp.exp(s - m)
        denom = jnp.sum(p, axis=-1, keepdims=True)
        p = p * pl.reciprocal(denom, approx=True)       # EUP slot (nearly free)
        ctx = jnp.dot(p.astype(jnp.bfloat16), v,
                      preferred_element_type=jnp.float32)
        o_ref[0, :, h * dh:(h + 1) * dh] = ctx.astype(o_ref.dtype)


def multi_head_attention(qkv, mask_bias, nh, dh):
    """qkv: [B, S, 3H] bf16 (1/sqrt(dh) pre-folded into Q); mask_bias: [B, 1, S] f32.

    Returns merged-head context [B, S, H] bf16 (no XLA head split/merge needed).
    """
    B, S, threeH = qkv.shape
    H = nh * dh
    assert threeH == 3 * H
    kern = functools.partial(_attention_kernel, nh=nh, dh=dh)
    return pl.pallas_call(
        kern,
        out_shape=jax.ShapeDtypeStruct((B, S, H), jnp.bfloat16),
        grid=(B,),
        in_specs=[
            pl.BlockSpec((1, S, threeH), lambda b: (b, 0, 0)),
            pl.BlockSpec((1, 1, S), lambda b: (b, 0, 0)),
        ],
        out_specs=pl.BlockSpec((1, S, H), lambda b: (b, 0, 0)),
        compiler_params=pltpu.CompilerParams(
            dimension_semantics=("parallel",),
            vmem_limit_bytes=_VMEM_LIMIT),
    )(qkv.astype(jnp.bfloat16), mask_bias)


# ----------------------------- model (glue) -------------------------------

def init_params(key, cfg):
    H, I, L = cfg["hidden"], cfg["intermediate"], cfg["label_num"]
    nh = cfg["heads"]
    dh = H // nh
    scale = 1.0 / math.sqrt(dh)
    keys = iter(jax.random.split(key, 64))

    def wf32(shape):
        return (0.02 * jax.random.normal(next(keys), shape)).astype(jnp.float32)

    def wbf16(shape):
        return (0.02 * jax.random.normal(next(keys), shape)).astype(jnp.bfloat16)

    params = {
        "word_emb": wf32((cfg["vocab"], H)),
        "pos_emb": wf32((cfg["max_pos"], H)),
        "type_emb": wf32((cfg["type_vocab"], H)),
        "emb_ln_g": jnp.ones((H,), jnp.float32),
        "emb_ln_b": jnp.zeros((H,), jnp.float32),
        "fc_w": wbf16((H, L)),
        "fc_b": jnp.zeros((L,), jnp.float32),
        "layers": [],
    }
    for _ in range(cfg["layers"]):
        q_w, k_w, v_w = wbf16((H, H)), wbf16((H, H)), wbf16((H, H))
        q_b = jnp.zeros((H,), jnp.float32)
        k_b = jnp.zeros((H,), jnp.float32)
        v_b = jnp.zeros((H,), jnp.float32)
        params["layers"].append({
            # fused QKV; the 1/sqrt(dh) attention scale is folded into the Q part
            "qkv_w": jnp.concatenate([q_w * scale, k_w, v_w], axis=1),   # [H, 3H]
            "qkv_b": jnp.concatenate([q_b * scale, k_b, v_b], axis=0),   # [3H]
            "ao_w": wbf16((H, H)), "ao_b": jnp.zeros((H,), jnp.float32),
            "attn_ln_g": jnp.ones((H,), jnp.float32),
            "attn_ln_b": jnp.zeros((H,), jnp.float32),
            "ff_w1": wbf16((H, I)), "ff_b1": jnp.zeros((I,), jnp.float32),
            "ff_w2": wbf16((I, H)), "ff_b2": jnp.zeros((H,), jnp.float32),
            "ffn_ln_g": jnp.ones((H,), jnp.float32),
            "ffn_ln_b": jnp.zeros((H,), jnp.float32),
        })
    return params


def bert_classifier_forward(params, input_ids, input_mask, segment_ids,
                            labels=None, *, cfg):
    B, S = input_ids.shape
    H = cfg["hidden"]
    nh = cfg["heads"]
    dh = H // nh

    # Embeddings (gather is XLA glue) + embedding LayerNorm (Pallas, bf16 out).
    emb = (params["word_emb"][input_ids]
           + params["pos_emb"][jnp.arange(S)][None]
           + params["type_emb"][segment_ids])
    x = layernorm(emb.reshape(B * S, H), params["emb_ln_g"], params["emb_ln_b"])

    mask_bias = ((1.0 - input_mask.astype(jnp.float32)) * -1e9).reshape(B, 1, S)

    for layer in params["layers"]:
        xf = x                                              # [B*S, H] bf16
        # Fused QKV projection: one matmul instead of three.
        qkv = dense(xf, layer["qkv_w"], layer["qkv_b"])     # [B*S, 3H] bf16
        # No XLA transpose: attention splits heads from the fused buffer
        # in-kernel and writes the merged-head [B, S, H] output directly.
        ctx = multi_head_attention(qkv.reshape(B, S, 3 * H), mask_bias, nh, dh)
        ctx = ctx.reshape(B * S, H)
        # attn-out projection fused with residual add + LayerNorm.
        x1 = dense_add_layernorm(ctx, layer["ao_w"], layer["ao_b"], xf,
                                 layer["attn_ln_g"], layer["attn_ln_b"])
        inter = dense(x1, layer["ff_w1"], layer["ff_b1"], activation="gelu")
        # FFN second matmul fused with residual add + LayerNorm.
        x = dense_add_layernorm(inter, layer["ff_w2"], layer["ff_b2"], x1,
                                layer["ffn_ln_g"], layer["ffn_ln_b"])

    # Dropout is identity at inference.  use_pooling not in {'max','avg'} -> CLS.
    cls = x.reshape(B, S, H)[:, 0, :].astype(jnp.float32)       # [B, H]
    # Tiny classifier head (label_num << 128 lanes): plain XLA beats a Pallas
    # call that would need masked partial stores.
    logits = cls @ params["fc_w"].astype(jnp.float32) + params["fc_b"]

    if labels is not None:
        logp = jax.nn.log_softmax(logits, axis=-1)
        nll = -jnp.take_along_axis(
            logp, labels.reshape(-1, 1).astype(jnp.int32), axis=-1)
        return jnp.mean(nll)

    prob = jax.nn.softmax(logits, axis=-1)
    pred = jnp.argmax(logits, axis=-1)
    return prob, pred


# --------------------------------- main ------------------------------------

if __name__ == "__main__":
    cfg = dict(vocab=128, hidden=32, heads=4, intermediate=64, layers=2,
               max_pos=64, type_vocab=2, label_num=4, batch=2, seq=8)
    key = jax.random.PRNGKey(0)
    pkey, ikey = jax.random.split(key)
    params = init_params(pkey, cfg)

    B, S = cfg["batch"], cfg["seq"]
    input_ids = jax.random.randint(ikey, (B, S), 0, cfg["vocab"], dtype=jnp.int32)
    input_mask = jnp.ones((B, S), jnp.int32).at[1, 6:].set(0)   # ragged mask
    segment_ids = jnp.zeros((B, S), jnp.int32)

    fwd = functools.partial(bert_classifier_forward, cfg=cfg)

    # Inference path: (prob, pred)
    prob, pred = jax.jit(fwd)(params, input_ids, input_mask, segment_ids)
    # Training path: cross-entropy loss
    labels = jnp.array([1, 3], jnp.int32)
    loss = jax.jit(fwd)(params, input_ids, input_mask, segment_ids, labels)

    jax.block_until_ready((prob, pred, loss))
    assert prob.shape == (B, cfg["label_num"]) and pred.shape == (B,)
    assert loss.shape == ()
    print("KERNEL_OK")
</pallas_src>

<mosaic_0001>
module attributes {stable_mosaic.version = 11 : i64} {
  func.func @_layernorm_kernel(%arg0: i32, %arg1: memref<16x32xf32, #tpu.memory_space<vmem>>, %arg2: memref<1x32xf32, #tpu.memory_space<vmem>>, %arg3: memref<1x32xf32, #tpu.memory_space<vmem>>, %arg4: memref<16x32xbf16, #tpu.memory_space<vmem>>) attributes {dimension_semantics = [#tpu.dimension_semantics<parallel>], iteration_bounds = array<i64: 1>, scalar_prefetch = 0 : i64, scratch_operands = 0 : i64, tpu.core_type = #tpu.core_type<tc>, window_params = [{transform_indices = @transform_0, window_bounds = array<i64: 16, 32>}, {pipeline_mode = #tpu.pipeline_mode<synchronous>, transform_indices = @transform_1, window_bounds = array<i64: 1, 32>}, {pipeline_mode = #tpu.pipeline_mode<synchronous>, transform_indices = @transform_2, window_bounds = array<i64: 1, 32>}, {transform_indices = @transform_3, window_bounds = array<i64: 16, 32>}]} {
    %c0 = arith.constant 0 : index
    %c0_0 = arith.constant 0 : index
    %0 = vector.load %arg1[%c0, %c0_0] : memref<16x32xf32, #tpu.memory_space<vmem>>, vector<16x32xf32>
    %cst = arith.constant dense<0.000000e+00> : vector<16xf32>
    %1 = vector.multi_reduction <add>, %0, %cst [1] : vector<16x32xf32> to vector<16xf32>
    %2 = vector.shape_cast %1 : vector<16xf32> to vector<16x1xf32>
    %cst_1 = arith.constant 3.200000e+01 : f32
    %3 = vector.broadcast %cst_1 : f32 to vector<16x1xf32>
    %4 = arith.divf %2, %3 : vector<16x1xf32>
    %5 = vector.broadcast %4 : vector<16x1xf32> to vector<16x32xf32>
    %6 = arith.subf %0, %5 : vector<16x32xf32>
    %7 = arith.mulf %6, %6 : vector<16x32xf32>
    %cst_2 = arith.constant dense<0.000000e+00> : vector<16xf32>
    %8 = vector.multi_reduction <add>, %7, %cst_2 [1] : vector<16x32xf32> to vector<16xf32>
    %9 = vector.shape_cast %8 : vector<16xf32> to vector<16x1xf32>
    %cst_3 = arith.constant 3.200000e+01 : f32
    %10 = vector.broadcast %cst_3 : f32 to vector<16x1xf32>
    %11 = arith.divf %9, %10 : vector<16x1xf32>
    %cst_4 = arith.constant 9.99999996E-13 : f32
    %12 = vector.broadcast %cst_4 : f32 to vector<16x1xf32>
    %13 = arith.addf %11, %12 : vector<16x1xf32>
    %14 = math.rsqrt %13 : vector<16x1xf32>
    %15 = vector.broadcast %4 : vector<16x1xf32> to vector<16x32xf32>
    %16 = arith.subf %0, %15 : vector<16x32xf32>
    %17 = vector.broadcast %14 : vector<16x1xf32> to vector<16x32xf32>
    %18 = arith.mulf %16, %17 : vector<16x32xf32>
    %c0_5 = arith.constant 0 : index
    %c0_6 = arith.constant 0 : index
    %19 = vector.load %arg2[%c0_5, %c0_6] : memref<1x32xf32, #tpu.memory_space<vmem>>, vector<1x32xf32>
    %20 = vector.broadcast %19 : vector<1x32xf32> to vector<16x32xf32>
    %21 = arith.mulf %18, %20 : vector<16x32xf32>
    %c0_7 = arith.constant 0 : index
    %c0_8 = arith.constant 0 : index
    %22 = vector.load %arg3[%c0_7, %c0_8] : memref<1x32xf32, #tpu.memory_space<vmem>>, vector<1x32xf32>
    %23 = vector.broadcast %22 : vector<1x32xf32> to vector<16x32xf32>
    %24 = arith.addf %21, %23 : vector<16x32xf32>
    %25 = arith.truncf %24 : vector<16x32xf32> to vector<16x32xbf16>
    %c0_9 = arith.constant 0 : index
    %c0_10 = arith.constant 0 : index
    %26 = vector.load %arg4[%c0_9, %c0_10] : memref<16x32xbf16, #tpu.memory_space<vmem>>, vector<16x32xbf16>
    tpu.vector_store %arg4[%c0_9, %c0_10], %25 {strides = array<i32>} : memref<16x32xbf16, #tpu.memory_space<vmem>>, vector<16x32xbf16>,
    return
  }
  func.func @transform_0(%arg0: i32) -> (i32, i32) {
    %c0_i32 = arith.constant 0 : i32
    %c0_i32_0 = arith.constant 0 : i32
    return %arg0, %c0_i32 : i32, i32
  }
  func.func @transform_1(%arg0: i32) -> (i32, i32) {
    %c0_i32 = arith.constant 0 : i32
    %c0_i32_0 = arith.constant 0 : i32
    %c0_i32_1 = arith.constant 0 : i32
    return %c0_i32, %c0_i32_0 : i32, i32
  }
  func.func @transform_2(%arg0: i32) -> (i32, i32) {
    %c0_i32 = arith.constant 0 : i32
    %c0_i32_0 = arith.constant 0 : i32
    %c0_i32_1 = arith.constant 0 : i32
    return %c0_i32, %c0_i32_0 : i32, i32
  }
  func.func @transform_3(%arg0: i32) -> (i32, i32) {
    %c0_i32 = arith.constant 0 : i32
    %c0_i32_0 = arith.constant 0 : i32
    return %arg0, %c0_i32 : i32, i32
  }
}

module attributes {stable_mosaic.version = 11 : i64} {
  func.func @_dense_kernel(%arg0: i32, %arg1: memref<16x32xbf16, #tpu.memory_space<vmem>>, %arg2: memref<32x96xbf16, #tpu.memory_space<vmem>>, %arg3: memref<1x96xf32, #tpu.memory_space<vmem>>, %arg4: memref<16x96xbf16, #tpu.memory_space<vmem>>) attributes {dimension_semantics = [#tpu.dimension_semantics<parallel>], iteration_bounds = array<i64: 1>, scalar_prefetch = 0 : i64, scratch_operands = 0 : i64, tpu.core_type = #tpu.core_type<tc>, window_params = [{transform_indices = @transform_0, window_bounds = array<i64: 16, 32>}, {pipeline_mode = #tpu.pipeline_mode<synchronous>, transform_indices = @transform_1, window_bounds = array<i64: 32, 96>}, {pipeline_mode = #tpu.pipeline_mode<synchronous>, transform_indices = @transform_2, window_bounds = array<i64: 1, 96>}, {transform_indices = @transform_3, window_bounds = array<i64: 16, 96>}]} {
    %c0 = arith.constant 0 : index
    %c0_0 = arith.constant 0 : index
    %0 = vector.load %arg1[%c0, %c0_0] : memref<16x32xbf16, #tpu.memory_space<vmem>>, vector<16x32xbf16>
    %c0_1 = arith.constant 0 : index
    %c0_2 = arith.constant 0 : index
    %1 = vector.load %arg2[%c0_1, %c0_2] : memref<32x96xbf16, #tpu.memory_space<vmem>>, vector<32x96xbf16>
    %cst = arith.constant dense<0.000000e+00> : vector<16x96xf32>
    %2 = tpu.matmul %0, %1, %cst {dimension_numbers = #tpu.dot_dimension_numbers<[1], [0], [0], [1], [0, 0, 1, 1], [], []>} : vector<16x32xbf16>, vector<32x96xbf16>, vector<16x96xf32> -> vector<16x96xf32>
    %c0_3 = arith.constant 0 : index
    %c0_4 = arith.constant 0 : index
    %3 = vector.load %arg3[%c0_3, %c0_4] : memref<1x96xf32, #tpu.memory_space<vmem>>, vector<1x96xf32>
    %4 = vector.broadcast %3 : vector<1x96xf32> to vector<16x96xf32>
    %5 = arith.addf %2, %4 : vector<16x96xf32>
    %6 = arith.truncf %5 : vector<16x96xf32> to vector<16x96xbf16>
    %c0_5 = arith.constant 0 : index
    %c0_6 = arith.constant 0 : index
    %7 = vector.load %arg4[%c0_5, %c0_6] : memref<16x96xbf16, #tpu.memory_space<vmem>>, vector<16x96xbf16>
    tpu.vector_store %arg4[%c0_5, %c0_6], %6 {strides = array<i32>} : memref<16x96xbf16, #tpu.memory_space<vmem>>, vector<16x96xbf16>,
    return
  }
  func.func @transform_0(%arg0: i32) -> (i32, i32) {
    %c0_i32 = arith.constant 0 : i32
    %c0_i32_0 = arith.constant 0 : i32
    return %arg0, %c0_i32 : i32, i32
  }
  func.func @transform_1(%arg0: i32) -> (i32, i32) {
    %c0_i32 = arith.constant 0 : i32
    %c0_i32_0 = arith.constant 0 : i32
    %c0_i32_1 = arith.constant 0 : i32
    return %c0_i32, %c0_i32_0 : i32, i32
  }
  func.func @transform_2(%arg0: i32) -> (i32, i32) {
    %c0_i32 = arith.constant 0 : i32
    %c0_i32_0 = arith.constant 0 : i32
    %c0_i32_1 = arith.constant 0 : i32
    return %c0_i32, %c0_i32_0 : i32, i32
  }
  func.func @transform_3(%arg0: i32) -> (i32, i32) {
    %c0_i32 = arith.constant 0 : i32
    %c0_i32_0 = arith.constant 0 : i32
    return %arg0, %c0_i32 : i32, i32
  }
}

module attributes {stable_mosaic.version = 11 : i64} {
  func.func @_dense_add_ln_kernel(%arg0: i32, %arg1: memref<16x32xbf16, #tpu.memory_space<vmem>>, %arg2: memref<32x32xbf16, #tpu.memory_space<vmem>>, %arg3: memref<1x32xf32, #tpu.memory_space<vmem>>, %arg4: memref<16x32xbf16, #tpu.memory_space<vmem>>, %arg5: memref<1x32xf32, #tpu.memory_space<vmem>>, %arg6: memref<1x32xf32, #tpu.memory_space<vmem>>, %arg7: memref<16x32xbf16, #tpu.memory_space<vmem>>) attributes {dimension_semantics = [#tpu.dimension_semantics<parallel>], iteration_bounds = array<i64: 1>, scalar_prefetch = 0 : i64, scratch_operands = 0 : i64, tpu.core_type = #tpu.core_type<tc>, window_params = [{transform_indices = @transform_0, window_bounds = array<i64: 16, 32>}, {pipeline_mode = #tpu.pipeline_mode<synchronous>, transform_indices = @transform_1, window_bounds = array<i64: 32, 32>}, {pipeline_mode = #tpu.pipeline_mode<synchronous>, transform_indices = @transform_2, window_bounds = array<i64: 1, 32>}, {transform_indices = @transform_3, window_bounds = array<i64: 16, 32>}, {pipeline_mode = #tpu.pipeline_mode<synchronous>, transform_indices = @transform_4, window_bounds = array<i64: 1, 32>}, {pipeline_mode = #tpu.pipeline_mode<synchronous>, transform_indices = @transform_5, window_bounds = array<i64: 1, 32>}, {transform_indices = @transform_6, window_bounds = array<i64: 16, 32>}]} {
    %c0 = arith.constant 0 : index
    %c0_0 = arith.constant 0 : index
    %0 = vector.load %arg1[%c0, %c0_0] : memref<16x32xbf16, #tpu.memory_space<vmem>>, vector<16x32xbf16>
    %c0_1 = arith.constant 0 : index
    %c0_2 = arith.constant 0 : index
    %1 = vector.load %arg2[%c0_1, %c0_2] : memref<32x32xbf16, #tpu.memory_space<vmem>>, vector<32x32xbf16>
    %cst = arith.constant dense<0.000000e+00> : vector<16x32xf32>
    %2 = tpu.matmul %0, %1, %cst {dimension_numbers = #tpu.dot_dimension_numbers<[1], [0], [0], [1], [0, 0, 1, 1], [], []>} : vector<16x32xbf16>, vector<32x32xbf16>, vector<16x32xf32> -> vector<16x32xf32>
    %c0_3 = arith.constant 0 : index
    %c0_4 = arith.constant 0 : index
    %3 = vector.load %arg3[%c0_3, %c0_4] : memref<1x32xf32, #tpu.memory_space<vmem>>, vector<1x32xf32>
    %4 = vector.broadcast %3 : vector<1x32xf32> to vector<16x32xf32>
    %5 = arith.addf %2, %4 : vector<16x32xf32>
    %c0_5 = arith.constant 0 : index
    %c0_6 = arith.constant 0 : index
    %6 = vector.load %arg4[%c0_5, %c0_6] : memref<16x32xbf16, #tpu.memory_space<vmem>>, vector<16x32xbf16>
    %7 = arith.extf %6 : vector<16x32xbf16> to vector<16x32xf32>
    %8 = arith.addf %5, %7 : vector<16x32xf32>
    %cst_7 = arith.constant dense<0.000000e+00> : vector<16xf32>
    %9 = vector.multi_reduction <add>, %8, %cst_7 [1] : vector<16x32xf32> to vector<16xf32>
    %10 = vector.shape_cast %9 : vector<16xf32> to vector<16x1xf32>
    %cst_8 = arith.constant 3.200000e+01 : f32
    %11 = vector.broadcast %cst_8 : f32 to vector<16x1xf32>
    %12 = arith.divf %10, %11 : vector<16x1xf32>
    %13 = vector.broadcast %12 : vector<16x1xf32> to vector<16x32xf32>
    %14 = arith.subf %8, %13 : vector<16x32xf32>
    %15 = arith.mulf %14, %14 : vector<16x32xf32>
    %cst_9 = arith.constant dense<0.000000e+00> : vector<16xf32>
    %16 = vector.multi_reduction <add>, %15, %cst_9 [1] : vector<16x32xf32> to vector<16xf32>
    %17 = vector.shape_cast %16 : vector<16xf32> to vector<16x1xf32>
    %cst_10 = arith.constant 3.200000e+01 : f32
    %18 = vector.broadcast %cst_10 : f32 to vector<16x1xf32>
    %19 = arith.divf %17, %18 : vector<16x1xf32>
    %cst_11 = arith.constant 9.99999996E-13 : f32
    %20 = vector.broadcast %cst_11 : f32 to vector<16x1xf32>
    %21 = arith.addf %19, %20 : vector<16x1xf32>
    %22 = math.rsqrt %21 : vector<16x1xf32>
    %23 = vector.broadcast %12 : vector<16x1xf32> to vector<16x32xf32>
    %24 = arith.subf %8, %23 : vector<16x32xf32>
    %25 = vector.broadcast %22 : vector<16x1xf32> to vector<16x32xf32>
    %26 = arith.mulf %24, %25 : vector<16x32xf32>
    %c0_12 = arith.constant 0 : index
    %c0_13 = arith.constant 0 : index
    %27 = vector.load %arg5[%c0_12, %c0_13] : memref<1x32xf32, #tpu.memory_space<vmem>>, vector<1x32xf32>
    %28 = vector.broadcast %27 : vector<1x32xf32> to vector<16x32xf32>
    %29 = arith.mulf %26, %28 : vector<16x32xf32>
    %c0_14 = arith.constant 0 : index
    %c0_15 = arith.constant 0 : index
    %30 = vector.load %arg6[%c0_14, %c0_15] : memref<1x32xf32, #tpu.memory_space<vmem>>, vector<1x32xf32>
    %31 = vector.broadcast %30 : vector<1x32xf32> to vector<16x32xf32>
    %32 = arith.addf %29, %31 : vector<16x32xf32>
    %33 = arith.truncf %32 : vector<16x32xf32> to vector<16x32xbf16>
    %c0_16 = arith.constant 0 : index
    %c0_17 = arith.constant 0 : index
    %34 = vector.load %arg7[%c0_16, %c0_17] : memref<16x32xbf16, #tpu.memory_space<vmem>>, vector<16x32xbf16>
    tpu.vector_store %arg7[%c0_16, %c0_17], %33 {strides = array<i32>} : memref<16x32xbf16, #tpu.memory_space<vmem>>, vector<16x32xbf16>,
    return
  }
  func.func @transform_0(%arg0: i32) -> (i32, i32) {
    %c0_i32 = arith.constant 0 : i32
    %c0_i32_0 = arith.constant 0 : i32
    return %arg0, %c0_i32 : i32, i32
  }
  func.func @transform_1(%arg0: i32) -> (i32, i32) {
    %c0_i32 = arith.constant 0 : i32
    %c0_i32_0 = arith.constant 0 : i32
    %c0_i32_1 = arith.constant 0 : i32
    return %c0_i32, %c0_i32_0 : i32, i32
  }
  func.func @transform_2(%arg0: i32) -> (i32, i32) {
    %c0_i32 = arith.constant 0 : i32
    %c0_i32_0 = arith.constant 0 : i32
    %c0_i32_1 = arith.constant 0 : i32
    return %c0_i32, %c0_i32_0 : i32, i32
  }
  func.func @transform_3(%arg0: i32) -> (i32, i32) {
    %c0_i32 = arith.constant 0 : i32
    %c0_i32_0 = arith.constant 0 : i32
    return %arg0, %c0_i32 : i32, i32
  }
  func.func @transform_4(%arg0: i32) -> (i32, i32) {
    %c0_i32 = arith.constant 0 : i32
    %c0_i32_0 = arith.constant 0 : i32
    %c0_i32_1 = arith.constant 0 : i32
    return %c0_i32, %c0_i32_0 : i32, i32
  }
  func.func @transform_5(%arg0: i32) -> (i32, i32) {
    %c0_i32 = arith.constant 0 : i32
    %c0_i32_0 = arith.constant 0 : i32
    %c0_i32_1 = arith.constant 0 : i32
    return %c0_i32, %c0_i32_0 : i32, i32
  }
  func.func @transform_6(%arg0: i32) -> (i32, i32) {
    %c0_i32 = arith.constant 0 : i32
    %c0_i32_0 = arith.constant 0 : i32
    return %arg0, %c0_i32 : i32, i32
  }
}

module attributes {stable_mosaic.version = 11 : i64} {
  func.func @_attention_kernel(%arg0: i32, %arg1: memref<1x8x96xbf16, #tpu.memory_space<vmem>>, %arg2: memref<1x1x8xf32, #tpu.memory_space<vmem>>, %arg3: memref<1x8x32xbf16, #tpu.memory_space<vmem>>) attributes {dimension_semantics = [#tpu.dimension_semantics<parallel>], iteration_bounds = array<i64: 2>, scalar_prefetch = 0 : i64, scratch_operands = 0 : i64, tpu.core_type = #tpu.core_type<tc>, window_params = [{transform_indices = @transform_0, window_bounds = array<i64: 1, 8, 96>}, {transform_indices = @transform_1, window_bounds = array<i64: 1, 1, 8>}, {transform_indices = @transform_2, window_bounds = array<i64: 1, 8, 32>}]} {
    %c0 = arith.constant 0 : index
    %c0_0 = arith.constant 0 : index
    %c0_1 = arith.constant 0 : index
    %0 = vector.load %arg2[%c0, %c0_0, %c0_1] : memref<1x1x8xf32, #tpu.memory_space<vmem>>, vector<1x1x8xf32>
    %1 = vector.shape_cast %0 : vector<1x1x8xf32> to vector<1x8xf32>
    %c0_2 = arith.constant 0 : index
    %c0_3 = arith.constant 0 : index
    %c0_4 = arith.constant 0 : index
    %2 = vector.load %arg1[%c0_2, %c0_3, %c0_4] : memref<1x8x96xbf16, #tpu.memory_space<vmem>>, vector<1x8x8xbf16>
    %3 = vector.shape_cast %2 : vector<1x8x8xbf16> to vector<8x8xbf16>
    %c0_5 = arith.constant 0 : index
    %c0_6 = arith.constant 0 : index
    %c32 = arith.constant 32 : index
    %4 = vector.load %arg1[%c0_5, %c0_6, %c32] : memref<1x8x96xbf16, #tpu.memory_space<vmem>>, vector<1x8x8xbf16>
    %5 = vector.shape_cast %4 : vector<1x8x8xbf16> to vector<8x8xbf16>
    %c0_7 = arith.constant 0 : index
    %c0_8 = arith.constant 0 : index
    %c64 = arith.constant 64 : index
    %6 = vector.load %arg1[%c0_7, %c0_8, %c64] : memref<1x8x96xbf16, #tpu.memory_space<vmem>>, vector<1x8x8xbf16>
    %7 = vector.shape_cast %6 : vector<1x8x8xbf16> to vector<8x8xbf16>
    %cst = arith.constant dense<0.000000e+00> : vector<8x8xf32>
    %8 = tpu.matmul %3, %5, %cst {dimension_numbers = #tpu.dot_dimension_numbers<[1], [1], [0], [0], [0, 0, 1, 0], [], []>} : vector<8x8xbf16>, vector<8x8xbf16>, vector<8x8xf32> -> vector<8x8xf32>
    %9 = vector.broadcast %1 : vector<1x8xf32> to vector<8x8xf32>
    %10 = arith.addf %8, %9 : vector<8x8xf32>
    %cst_9 = arith.constant dense<0xFF800000> : vector<8xf32>
    %11 = vector.multi_reduction <maximumf>, %10, %cst_9 [1] : vector<8x8xf32> to vector<8xf32>
    %12 = vector.shape_cast %11 : vector<8xf32> to vector<8x1xf32>
    %13 = vector.broadcast %12 : vector<8x1xf32> to vector<8x8xf32>
    %14 = arith.subf %10, %13 : vector<8x8xf32>
    %15 = math.exp %14 : vector<8x8xf32>
    %cst_10 = arith.constant dense<0.000000e+00> : vector<8xf32>
    %16 = vector.multi_reduction <add>, %15, %cst_10 [1] : vector<8x8xf32> to vector<8xf32>
    %17 = vector.shape_cast %16 : vector<8xf32> to vector<8x1xf32>
    %18 = tpu.reciprocal %17 {approx = true} : vector<8x1xf32> -> vector<8x1xf32>
    %19 = vector.broadcast %18 : vector<8x1xf32> to vector<8x8xf32>
    %20 = arith.mulf %15, %19 : vector<8x8xf32>
    %21 = arith.truncf %20 : vector<8x8xf32> to vector<8x8xbf16>
    %cst_11 = arith.constant dense<0.000000e+00> : vector<8x8xf32>
    %22 = tpu.matmul %21, %7, %cst_11 {dimension_numbers = #tpu.dot_dimension_numbers<[1], [0], [0], [1], [0, 0, 1, 1], [], []>} : vector<8x8xbf16>, vector<8x8xbf16>, vector<8x8xf32> -> vector<8x8xf32>
    %23 = arith.truncf %22 : vector<8x8xf32> to vector<8x8xbf16>
    %c0_12 = arith.constant 0 : index
    %c0_13 = arith.constant 0 : index
    %c0_14 = arith.constant 0 : index
    %24 = vector.load %arg3[%c0_12, %c0_13, %c0_14] : memref<1x8x32xbf16, #tpu.memory_space<vmem>>, vector<1x8x8xbf16>
    %25 = vector.shape_cast %24 : vector<1x8x8xbf16> to vector<8x8xbf16>
    %26 = vector.shape_cast %23 : vector<8x8xbf16> to vector<1x8x8xbf16>
    tpu.vector_store %arg3[%c0_12, %c0_13, %c0_14], %26 {strides = array<i32>} : memref<1x8x32xbf16, #tpu.memory_space<vmem>>, vector<1x8x8xbf16>,
    %c0_15 = arith.constant 0 : index
    %c0_16 = arith.constant 0 : index
    %c8 = arith.constant 8 : index
    %27 = vector.load %arg1[%c0_15, %c0_16, %c8] : memref<1x8x96xbf16, #tpu.memory_space<vmem>>, vector<1x8x8xbf16>
    %28 = vector.shape_cast %27 : vector<1x8x8xbf16> to vector<8x8xbf16>
    %c0_17 = arith.constant 0 : index
    %c0_18 = arith.constant 0 : index
    %c40 = arith.constant 40 : index
    %29 = vector.load %arg1[%c0_17, %c0_18, %c40] : memref<1x8x96xbf16, #tpu.memory_space<vmem>>, vector<1x8x8xbf16>
    %30 = vector.shape_cast %29 : vector<1x8x8xbf16> to vector<8x8xbf16>
    %c0_19 = arith.constant 0 : index
    %c0_20 = arith.constant 0 : index
    %c72 = arith.constant 72 : index
    %31 = vector.load %arg1[%c0_19, %c0_20, %c72] : memref<1x8x96xbf16, #tpu.memory_space<vmem>>, vector<1x8x8xbf16>
    %32 = vector.shape_cast %31 : vector<1x8x8xbf16> to vector<8x8xbf16>
    %cst_21 = arith.constant dense<0.000000e+00> : vector<8x8xf32>
    %33 = tpu.matmul %28, %30, %cst_21 {dimension_numbers = #tpu.dot_dimension_numbers<[1], [1], [0], [0], [0, 0, 1, 0], [], []>} : vector<8x8xbf16>, vector<8x8xbf16>, vector<8x8xf32> -> vector<8x8xf32>
    %34 = vector.broadcast %1 : vector<1x8xf32> to vector<8x8xf32>
    %35 = arith.addf %33, %34 : vector<8x8xf32>
    %cst_22 = arith.constant dense<0xFF800000> : vector<8xf32>
    %36 = vector.multi_reduction <maximumf>, %35, %cst_22 [1] : vector<8x8xf32> to vector<8xf32>
    %37 = vector.shape_cast %36 : vector<8xf32> to vector<8x1xf32>
    %38 = vector.broadcast %37 : vector<8x1xf32> to vector<8x8xf32>
    %39 = arith.subf %35, %38 : vector<8x8xf32>
    %40 = math.exp %39 : vector<8x8xf32>
    %cst_23 = arith.constant dense<0.000000e+00> : vector<8xf32>
    %41 = vector.multi_reduction <add>, %40, %cst_23 [1] : vector<8x8xf32> to vector<8xf32>
    %42 = vector.shape_cast %41 : vector<8xf32> to vector<8x1xf32>
    %43 = tpu.reciprocal %42 {approx = true} : vector<8x1xf32> -> vector<8x1xf32>
    %44 = vector.broadcast %43 : vector<8x1xf32> to vector<8x8xf32>
    %45 = arith.mulf %40, %44 : vector<8x8xf32>
    %46 = arith.truncf %45 : vector<8x8xf32> to vector<8x8xbf16>
    %cst_24 = arith.constant dense<0.000000e+00> : vector<8x8xf32>
    %47 = tpu.matmul %46, %32, %cst_24 {dimension_numbers = #tpu.dot_dimension_numbers<[1], [0], [0], [1], [0, 0, 1, 1], [], []>} : vector<8x8xbf16>, vector<8x8xbf16>, vector<8x8xf32> -> vector<8x8xf32>
    %48 = arith.truncf %47 : vector<8x8xf32> to vector<8x8xbf16>
    %c0_25 = arith.constant 0 : index
    %c0_26 = arith.constant 0 : index
    %c8_27 = arith.constant 8 : index
    %49 = vector.load %arg3[%c0_25, %c0_26, %c8_27] : memref<1x8x32xbf16, #tpu.memory_space<vmem>>, vector<1x8x8xbf16>
    %50 = vector.shape_cast %49 : vector<1x8x8xbf16> to vector<8x8xbf16>
    %51 = vector.shape_cast %48 : vector<8x8xbf16> to vector<1x8x8xbf16>
    tpu.vector_store %arg3[%c0_25, %c0_26, %c8_27], %51 {strides = array<i32>} : memref<1x8x32xbf16, #tpu.memory_space<vmem>>, vector<1x8x8xbf16>,
    %c0_28 = arith.constant 0 : index
    %c0_29 = arith.constant 0 : index
    %c16 = arith.constant 16 : index
    %52 = vector.load %arg1[%c0_28, %c0_29, %c16] : memref<1x8x96xbf16, #tpu.memory_space<vmem>>, vector<1x8x8xbf16>
    %53 = vector.shape_cast %52 : vector<1x8x8xbf16> to vector<8x8xbf16>
    %c0_30 = arith.constant 0 : index
    %c0_31 = arith.constant 0 : index
    %c48 = arith.constant 48 : index
    %54 = vector.load %arg1[%c0_30, %c0_31, %c48] : memref<1x8x96xbf16, #tpu.memory_space<vmem>>, vector<1x8x8xbf16>
    %55 = vector.shape_cast %54 : vector<1x8x8xbf16> to vector<8x8xbf16>
    %c0_32 = arith.constant 0 : index
    %c0_33 = arith.constant 0 : index
    %c80 = arith.constant 80 : index
    %56 = vector.load %arg1[%c0_32, %c0_33, %c80] : memref<1x8x96xbf16, #tpu.memory_space<vmem>>, vector<1x8x8xbf16>
    %57 = vector.shape_cast %56 : vector<1x8x8xbf16> to vector<8x8xbf16>
    %cst_34 = arith.constant dense<0.000000e+00> : vector<8x8xf32>
    %58 = tpu.matmul %53, %55, %cst_34 {dimension_numbers = #tpu.dot_dimension_numbers<[1], [1], [0], [0], [0, 0, 1, 0], [], []>} : vector<8x8xbf16>, vector<8x8xbf16>, vector<8x8xf32> -> vector<8x8xf32>
    %59 = vector.broadcast %1 : vector<1x8xf32> to vector<8x8xf32>
    %60 = arith.addf %58, %59 : vector<8x8xf32>
    %cst_35 = arith.constant dense<0xFF800000> : vector<8xf32>
    %61 = vector.multi_reduction <maximumf>, %60, %cst_35 [1] : vector<8x8xf32> to vector<8xf32>
    %62 = vector.shape_cast %61 : vector<8xf32> to vector<8x1xf32>
    %63 = vector.broadcast %62 : vector<8x1xf32> to vector<8x8xf32>
    %64 = arith.subf %60, %63 : vector<8x8xf32>
    %65 = math.exp %64 : vector<8x8xf32>
    %cst_36 = arith.constant dense<0.000000e+00> : vector<8xf32>
    %66 = vector.multi_reduction <add>, %65, %cst_36 [1] : vector<8x8xf32> to vector<8xf32>
    %67 = vector.shape_cast %66 : vector<8xf32> to vector<8x1xf32>
    %68 = tpu.reciprocal %67 {approx = true} : vector<8x1xf32> -> vector<8x1xf32>
    %69 = vector.broadcast %68 : vector<8x1xf32> to vector<8x8xf32>
    %70 = arith.mulf %65, %69 : vector<8x8xf32>
    %71 = arith.truncf %70 : vector<8x8xf32> to vector<8x8xbf16>
    %cst_37 = arith.constant dense<0.000000e+00> : vector<8x8xf32>
    %72 = tpu.matmul %71, %57, %cst_37 {dimension_numbers = #tpu.dot_dimension_numbers<[1], [0], [0], [1], [0, 0, 1, 1], [], []>} : vector<8x8xbf16>, vector<8x8xbf16>, vector<8x8xf32> -> vector<8x8xf32>
    %73 = arith.truncf %72 : vector<8x8xf32> to vector<8x8xbf16>
    %c0_38 = arith.constant 0 : index
    %c0_39 = arith.constant 0 : index
    %c16_40 = arith.constant 16 : index
    %74 = vector.load %arg3[%c0_38, %c0_39, %c16_40] : memref<1x8x32xbf16, #tpu.memory_space<vmem>>, vector<1x8x8xbf16>
    %75 = vector.shape_cast %74 : vector<1x8x8xbf16> to vector<8x8xbf16>
    %76 = vector.shape_cast %73 : vector<8x8xbf16> to vector<1x8x8xbf16>
    tpu.vector_store %arg3[%c0_38, %c0_39, %c16_40], %76 {strides = array<i32>} : memref<1x8x32xbf16, #tpu.memory_space<vmem>>, vector<1x8x8xbf16>,
    %c0_41 = arith.constant 0 : index
    %c0_42 = arith.constant 0 : index
    %c24 = arith.constant 24 : index
    %77 = vector.load %arg1[%c0_41, %c0_42, %c24] : memref<1x8x96xbf16, #tpu.memory_space<vmem>>, vector<1x8x8xbf16>
    %78 = vector.shape_cast %77 : vector<1x8x8xbf16> to vector<8x8xbf16>
    %c0_43 = arith.constant 0 : index
    %c0_44 = arith.constant 0 : index
    %c56 = arith.constant 56 : index
    %79 = vector.load %arg1[%c0_43, %c0_44, %c56] : memref<1x8x96xbf16, #tpu.memory_space<vmem>>, vector<1x8x8xbf16>
    %80 = vector.shape_cast %79 : vector<1x8x8xbf16> to vector<8x8xbf16>
    %c0_45 = arith.constant 0 : index
    %c0_46 = arith.constant 0 : index
    %c88 = arith.constant 88 : index
    %81 = vector.load %arg1[%c0_45, %c0_46, %c88] : memref<1x8x96xbf16, #tpu.memory_space<vmem>>, vector<1x8x8xbf16>
    %82 = vector.shape_cast %81 : vector<1x8x8xbf16> to vector<8x8xbf16>
    %cst_47 = arith.constant dense<0.000000e+00> : vector<8x8xf32>
    %83 = tpu.matmul %78, %80, %cst_47 {dimension_numbers = #tpu.dot_dimension_numbers<[1], [1], [0], [0], [0, 0, 1, 0], [], []>} : vector<8x8xbf16>, vector<8x8xbf16>, vector<8x8xf32> -> vector<8x8xf32>
    %84 = vector.broadcast %1 : vector<1x8xf32> to vector<8x8xf32>
    %85 = arith.addf %83, %84 : vector<8x8xf32>
    %cst_48 = arith.constant dense<0xFF800000> : vector<8xf32>
    %86 = vector.multi_reduction <maximumf>, %85, %cst_48 [1] : vector<8x8xf32> to vector<8xf32>
    %87 = vector.shape_cast %86 : vector<8xf32> to vector<8x1xf32>
    %88 = vector.broadcast %87 : vector<8x1xf32> to vector<8x8xf32>
    %89 = arith.subf %85, %88 : vector<8x8xf32>
    %90 = math.exp %89 : vector<8x8xf32>
    %cst_49 = arith.constant dense<0.000000e+00> : vector<8xf32>
    %91 = vector.multi_reduction <add>, %90, %cst_49 [1] : vector<8x8xf32> to vector<8xf32>
    %92 = vector.shape_cast %91 : vector<8xf32> to vector<8x1xf32>
    %93 = tpu.reciprocal %92 {approx = true} : vector<8x1xf32> -> vector<8x1xf32>
    %94 = vector.broadcast %93 : vector<8x1xf32> to vector<8x8xf32>
    %95 = arith.mulf %90, %94 : vector<8x8xf32>
    %96 = arith.truncf %95 : vector<8x8xf32> to vector<8x8xbf16>
    %cst_50 = arith.constant dense<0.000000e+00> : vector<8x8xf32>
    %97 = tpu.matmul %96, %82, %cst_50 {dimension_numbers = #tpu.dot_dimension_numbers<[1], [0], [0], [1], [0, 0, 1, 1], [], []>} : vector<8x8xbf16>, vector<8x8xbf16>, vector<8x8xf32> -> vector<8x8xf32>
    %98 = arith.truncf %97 : vector<8x8xf32> to vector<8x8xbf16>
    %c0_51 = arith.constant 0 : index
    %c0_52 = arith.constant 0 : index
    %c24_53 = arith.constant 24 : index
    %99 = vector.load %arg3[%c0_51, %c0_52, %c24_53] : memref<1x8x32xbf16, #tpu.memory_space<vmem>>, vector<1x8x8xbf16>
    %100 = vector.shape_cast %99 : vector<1x8x8xbf16> to vector<8x8xbf16>
    %101 = vector.shape_cast %98 : vector<8x8xbf16> to vector<1x8x8xbf16>
    tpu.vector_store %arg3[%c0_51, %c0_52, %c24_53], %101 {strides = array<i32>} : memref<1x8x32xbf16, #tpu.memory_space<vmem>>, vector<1x8x8xbf16>,
    return
  }
  func.func @transform_0(%arg0: i32) -> (i32, i32, i32) {
    %c0_i32 = arith.constant 0 : i32
    %c0_i32_0 = arith.constant 0 : i32
    %c0_i32_1 = arith.constant 0 : i32
    return %arg0, %c0_i32, %c0_i32_0 : i32, i32, i32
  }
  func.func @transform_1(%arg0: i32) -> (i32, i32, i32) {
    %c0_i32 = arith.constant 0 : i32
    %c0_i32_0 = arith.constant 0 : i32
    %c0_i32_1 = arith.constant 0 : i32
    return %arg0, %c0_i32, %c0_i32_0 : i32, i32, i32
  }
  func.func @transform_2(%arg0: i32) -> (i32, i32, i32) {
    %c0_i32 = arith.constant 0 : i32
    %c0_i32_0 = arith.constant 0 : i32
    %c0_i32_1 = arith.constant 0 : i32
    return %arg0, %c0_i32, %c0_i32_0 : i32, i32, i32
  }
}

module attributes {stable_mosaic.version = 11 : i64} {
  func.func @_dense_add_ln_kernel(%arg0: i32, %arg1: memref<16x64xbf16, #tpu.memory_space<vmem>>, %arg2: memref<64x32xbf16, #tpu.memory_space<vmem>>, %arg3: memref<1x32xf32, #tpu.memory_space<vmem>>, %arg4: memref<16x32xbf16, #tpu.memory_space<vmem>>, %arg5: memref<1x32xf32, #tpu.memory_space<vmem>>, %arg6: memref<1x32xf32, #tpu.memory_space<vmem>>, %arg7: memref<16x32xbf16, #tpu.memory_space<vmem>>) attributes {dimension_semantics = [#tpu.dimension_semantics<parallel>], iteration_bounds = array<i64: 1>, scalar_prefetch = 0 : i64, scratch_operands = 0 : i64, tpu.core_type = #tpu.core_type<tc>, window_params = [{transform_indices = @transform_0, window_bounds = array<i64: 16, 64>}, {pipeline_mode = #tpu.pipeline_mode<synchronous>, transform_indices = @transform_1, window_bounds = array<i64: 64, 32>}, {pipeline_mode = #tpu.pipeline_mode<synchronous>, transform_indices = @transform_2, window_bounds = array<i64: 1, 32>}, {transform_indices = @transform_3, window_bounds = array<i64: 16, 32>}, {pipeline_mode = #tpu.pipeline_mode<synchronous>, transform_indices = @transform_4, window_bounds = array<i64: 1, 32>}, {pipeline_mode = #tpu.pipeline_mode<synchronous>, transform_indices = @transform_5, window_bounds = array<i64: 1, 32>}, {transform_indices = @transform_6, window_bounds = array<i64: 16, 32>}]} {
    %c0 = arith.constant 0 : index
    %c0_0 = arith.constant 0 : index
    %0 = vector.load %arg1[%c0, %c0_0] : memref<16x64xbf16, #tpu.memory_space<vmem>>, vector<16x64xbf16>
    %c0_1 = arith.constant 0 : index
    %c0_2 = arith.constant 0 : index
    %1 = vector.load %arg2[%c0_1, %c0_2] : memref<64x32xbf16, #tpu.memory_space<vmem>>, vector<64x32xbf16>
    %cst = arith.constant dense<0.000000e+00> : vector<16x32xf32>
    %2 = tpu.matmul %0, %1, %cst {dimension_numbers = #tpu.dot_dimension_numbers<[1], [0], [0], [1], [0, 0, 1, 1], [], []>} : vector<16x64xbf16>, vector<64x32xbf16>, vector<16x32xf32> -> vector<16x32xf32>
    %c0_3 = arith.constant 0 : index
    %c0_4 = arith.constant 0 : index
    %3 = vector.load %arg3[%c0_3, %c0_4] : memref<1x32xf32, #tpu.memory_space<vmem>>, vector<1x32xf32>
    %4 = vector.broadcast %3 : vector<1x32xf32> to vector<16x32xf32>
    %5 = arith.addf %2, %4 : vector<16x32xf32>
    %c0_5 = arith.constant 0 : index
    %c0_6 = arith.constant 0 : index
    %6 = vector.load %arg4[%c0_5, %c0_6] : memref<16x32xbf16, #tpu.memory_space<vmem>>, vector<16x32xbf16>
    %7 = arith.extf %6 : vector<16x32xbf16> to vector<16x32xf32>
    %8 = arith.addf %5, %7 : vector<16x32xf32>
    %cst_7 = arith.constant dense<0.000000e+00> : vector<16xf32>
    %9 = vector.multi_reduction <add>, %8, %cst_7 [1] : vector<16x32xf32> to vector<16xf32>
    %10 = vector.shape_cast %9 : vector<16xf32> to vector<16x1xf32>
    %cst_8 = arith.constant 3.200000e+01 : f32
    %11 = vector.broadcast %cst_8 : f32 to vector<16x1xf32>
    %12 = arith.divf %10, %11 : vector<16x1xf32>
    %13 = vector.broadcast %12 : vector<16x1xf32> to vector<16x32xf32>
    %14 = arith.subf %8, %13 : vector<16x32xf32>
    %15 = arith.mulf %14, %14 : vector<16x32xf32>
    %cst_9 = arith.constant dense<0.000000e+00> : vector<16xf32>
    %16 = vector.multi_reduction <add>, %15, %cst_9 [1] : vector<16x32xf32> to vector<16xf32>
    %17 = vector.shape_cast %16 : vector<16xf32> to vector<16x1xf32>
    %cst_10 = arith.constant 3.200000e+01 : f32
    %18 = vector.broadcast %cst_10 : f32 to vector<16x1xf32>
    %19 = arith.divf %17, %18 : vector<16x1xf32>
    %cst_11 = arith.constant 9.99999996E-13 : f32
    %20 = vector.broadcast %cst_11 : f32 to vector<16x1xf32>
    %21 = arith.addf %19, %20 : vector<16x1xf32>
    %22 = math.rsqrt %21 : vector<16x1xf32>
    %23 = vector.broadcast %12 : vector<16x1xf32> to vector<16x32xf32>
    %24 = arith.subf %8, %23 : vector<16x32xf32>
    %25 = vector.broadcast %22 : vector<16x1xf32> to vector<16x32xf32>
    %26 = arith.mulf %24, %25 : vector<16x32xf32>
    %c0_12 = arith.constant 0 : index
    %c0_13 = arith.constant 0 : index
    %27 = vector.load %arg5[%c0_12, %c0_13] : memref<1x32xf32, #tpu.memory_space<vmem>>, vector<1x32xf32>
    %28 = vector.broadcast %27 : vector<1x32xf32> to vector<16x32xf32>
    %29 = arith.mulf %26, %28 : vector<16x32xf32>
    %c0_14 = arith.constant 0 : index
    %c0_15 = arith.constant 0 : index
    %30 = vector.load %arg6[%c0_14, %c0_15] : memref<1x32xf32, #tpu.memory_space<vmem>>, vector<1x32xf32>
    %31 = vector.broadcast %30 : vector<1x32xf32> to vector<16x32xf32>
    %32 = arith.addf %29, %31 : vector<16x32xf32>
    %33 = arith.truncf %32 : vector<16x32xf32> to vector<16x32xbf16>
    %c0_16 = arith.constant 0 : index
    %c0_17 = arith.constant 0 : index
    %34 = vector.load %arg7[%c0_16, %c0_17] : memref<16x32xbf16, #tpu.memory_space<vmem>>, vector<16x32xbf16>
    tpu.vector_store %arg7[%c0_16, %c0_17], %33 {strides = array<i32>} : memref<16x32xbf16, #tpu.memory_space<vmem>>, vector<16x32xbf16>,
    return
  }
  func.func @transform_0(%arg0: i32) -> (i32, i32) {
    %c0_i32 = arith.constant 0 : i32
    %c0_i32_0 = arith.constant 0 : i32
    return %arg0, %c0_i32 : i32, i32
  }
  func.func @transform_1(%arg0: i32) -> (i32, i32) {
    %c0_i32 = arith.constant 0 : i32
    %c0_i32_0 = arith.constant 0 : i32
    %c0_i32_1 = arith.constant 0 : i32
    return %c0_i32, %c0_i32_0 : i32, i32
  }
  func.func @transform_2(%arg0: i32) -> (i32, i32) {
    %c0_i32 = arith.constant 0 : i32
    %c0_i32_0 = arith.constant 0 : i32
    %c0_i32_1 = arith.constant 0 : i32
    return %c0_i32, %c0_i32_0 : i32, i32
  }
  func.func @transform_3(%arg0: i32) -> (i32, i32) {
    %c0_i32 = arith.constant 0 : i32
    %c0_i32_0 = arith.constant 0 : i32
    return %arg0, %c0_i32 : i32, i32
  }
  func.func @transform_4(%arg0: i32) -> (i32, i32) {
    %c0_i32 = arith.constant 0 : i32
    %c0_i32_0 = arith.constant 0 : i32
    %c0_i32_1 = arith.constant 0 : i32
    return %c0_i32, %c0_i32_0 : i32, i32
  }
  func.func @transform_5(%arg0: i32) -> (i32, i32) {
    %c0_i32 = arith.constant 0 : i32
    %c0_i32_0 = arith.constant 0 : i32
    %c0_i32_1 = arith.constant 0 : i32
    return %c0_i32, %c0_i32_0 : i32, i32
  }
  func.func @transform_6(%arg0: i32) -> (i32, i32) {
    %c0_i32 = arith.constant 0 : i32
    %c0_i32_0 = arith.constant 0 : i32
    return %arg0, %c0_i32 : i32, i32
  }
}

module attributes {stable_mosaic.version = 11 : i64} {
  func.func @_dense_kernel(%arg0: i32, %arg1: memref<16x32xbf16, #tpu.memory_space<vmem>>, %arg2: memref<32x64xbf16, #tpu.memory_space<vmem>>, %arg3: memref<1x64xf32, #tpu.memory_space<vmem>>, %arg4: memref<16x64xbf16, #tpu.memory_space<vmem>>) attributes {dimension_semantics = [#tpu.dimension_semantics<parallel>], iteration_bounds = array<i64: 1>, scalar_prefetch = 0 : i64, scratch_operands = 0 : i64, tpu.core_type = #tpu.core_type<tc>, window_params = [{transform_indices = @transform_0, window_bounds = array<i64: 16, 32>}, {pipeline_mode = #tpu.pipeline_mode<synchronous>, transform_indices = @transform_1, window_bounds = array<i64: 32, 64>}, {pipeline_mode = #tpu.pipeline_mode<synchronous>, transform_indices = @transform_2, window_bounds = array<i64: 1, 64>}, {transform_indices = @transform_3, window_bounds = array<i64: 16, 64>}]} {
    %c0 = arith.constant 0 : index
    %c0_0 = arith.constant 0 : index
    %0 = vector.load %arg1[%c0, %c0_0] : memref<16x32xbf16, #tpu.memory_space<vmem>>, vector<16x32xbf16>
    %c0_1 = arith.constant 0 : index
    %c0_2 = arith.constant 0 : index
    %1 = vector.load %arg2[%c0_1, %c0_2] : memref<32x64xbf16, #tpu.memory_space<vmem>>, vector<32x64xbf16>
    %cst = arith.constant dense<0.000000e+00> : vector<16x64xf32>
    %2 = tpu.matmul %0, %1, %cst {dimension_numbers = #tpu.dot_dimension_numbers<[1], [0], [0], [1], [0, 0, 1, 1], [], []>} : vector<16x32xbf16>, vector<32x64xbf16>, vector<16x64xf32> -> vector<16x64xf32>
    %c0_3 = arith.constant 0 : index
    %c0_4 = arith.constant 0 : index
    %3 = vector.load %arg3[%c0_3, %c0_4] : memref<1x64xf32, #tpu.memory_space<vmem>>, vector<1x64xf32>
    %4 = vector.broadcast %3 : vector<1x64xf32> to vector<16x64xf32>
    %5 = arith.addf %2, %4 : vector<16x64xf32>
    %cst_5 = arith.constant 5.000000e-01 : f32
    %6 = vector.broadcast %cst_5 : f32 to vector<16x64xf32>
    %7 = arith.mulf %6, %5 : vector<16x64xf32>
    %cst_6 = arith.constant 4.471500e-02 : f32
    %8 = vector.broadcast %cst_6 : f32 to vector<16x64xf32>
    %9 = arith.mulf %8, %5 : vector<16x64xf32>
    %10 = arith.mulf %9, %5 : vector<16x64xf32>
    %11 = arith.mulf %10, %5 : vector<16x64xf32>
    %12 = arith.addf %5, %11 : vector<16x64xf32>
    %cst_7 = arith.constant 0.797884583 : f32
    %13 = vector.broadcast %cst_7 : f32 to vector<16x64xf32>
    %14 = arith.mulf %13, %12 : vector<16x64xf32>
    %15 = math.tanh %14 : vector<16x64xf32>
    %cst_8 = arith.constant 1.000000e+00 : f32
    %16 = vector.broadcast %cst_8 : f32 to vector<16x64xf32>
    %17 = arith.addf %16, %15 : vector<16x64xf32>
    %18 = arith.mulf %7, %17 : vector<16x64xf32>
    %19 = arith.truncf %18 : vector<16x64xf32> to vector<16x64xbf16>
    %c0_9 = arith.constant 0 : index
    %c0_10 = arith.constant 0 : index
    %20 = vector.load %arg4[%c0_9, %c0_10] : memref<16x64xbf16, #tpu.memory_space<vmem>>, vector<16x64xbf16>
    tpu.vector_store %arg4[%c0_9, %c0_10], %19 {strides = array<i32>} : memref<16x64xbf16, #tpu.memory_space<vmem>>, vector<16x64xbf16>,
    return
  }
  func.func @transform_0(%arg0: i32) -> (i32, i32) {
    %c0_i32 = arith.constant 0 : i32
    %c0_i32_0 = arith.constant 0 : i32
    return %arg0, %c0_i32 : i32, i32
  }
  func.func @transform_1(%arg0: i32) -> (i32, i32) {
    %c0_i32 = arith.constant 0 : i32
    %c0_i32_0 = arith.constant 0 : i32
    %c0_i32_1 = arith.constant 0 : i32
    return %c0_i32, %c0_i32_0 : i32, i32
  }
  func.func @transform_2(%arg0: i32) -> (i32, i32) {
    %c0_i32 = arith.constant 0 : i32
    %c0_i32_0 = arith.constant 0 : i32
    %c0_i32_1 = arith.constant 0 : i32
    return %c0_i32, %c0_i32_0 : i32, i32
  }
  func.func @transform_3(%arg0: i32) -> (i32, i32) {
    %c0_i32 = arith.constant 0 : i32
    %c0_i32_0 = arith.constant 0 : i32
    return %arg0, %c0_i32 : i32, i32
  }
}

</mosaic_0001>

<bundles_post_ra>
// kernel: bert_classifier_forward.14
= control target key start
LH: loop header
LB: loop body
LE: loop exit
PB: predicated region body
PF: predicated region fallthrough
CT: control target
= control target key end

     0   :  { %11 = vsyncpa [#allocation3], 0  ;;  %s620_s0 = inlined_call_operand.hbm [shape: bf16[16,32], index: 0, kind: input, shape index: {}]   ;;  %s621_s1 = inlined_call_operand.hbm [shape: bf16[32,32], index: 1, kind: input, shape index: {}]   ;;  %s622_s2 = inlined_call_operand.hbm [shape: f32[1,32], index: 2, kind: input, shape index: {}]   ;;  %s623_s3 = inlined_call_operand.hbm [shape: bf16[16,32], index: 3, kind: input, shape index: {}]   ;;  %s624_s4 = inlined_call_operand.hbm [shape: f32[1,32], index: 4, kind: input, shape index: {}]   ;;  %s625_s5 = inlined_call_operand.hbm [shape: f32[1,32], index: 5, kind: input, shape index: {}]   ;;  %s626_s6 = inlined_call_operand.hbm [shape: bf16[16,32], index: 6, kind: output, shape index: {}]  }
   0x1   :  { %12 = vsyncpa [#allocation6], 0 }
   0x2   :  { %13 = vsyncpa [#allocation9], 0 }
   0x3   :  { %14 = vsyncpa [#allocation12], 0 }
   0x4   :  { %15 = vsyncpa [#allocation4], 0  ;;  %s466_s21 = smov [#allocation5]   ;;  %s467_s23 = smov [#allocation8]  }
   0x5   :  { %s33_s22 = sshll.u32 %s466_s21, 4  ;;  %s55_s24 = sshll.u32 %s467_s23, 4  ;;  %s34_s22 = int_to_ptr.vmem [resolvable:$true] %s33_s22  ;;  %s512_s24 = int_to_ptr.vmem [resolvable:$true] %s55_s24 }
   0x6   :  { %s302_s27 = scalar_lea.hbm %s621_s1, 256 }
   0x7   :  { %p303_p0 = scmp.ne.s32.totalorder %s621_s1, %s302_s27  ;;  %p306_p1 = scmp.lt.u32.totalorder %s302_s27, %s621_s1 }
   0x9   :  { %p308_p2 = pnand %p306_p1, %p303_p0 }
   0xb   :  { %311 = shalt.err (!%p308_p2)
}
   0xc   :  { %s312_s8 = scalar_lea.vmem %s34_s22, 256  ;;  %p317_p4 = scmp.lt.s32.totalorder %s34_s22, %s34_s22 }
   0xd   :  { %p313_p3 = scmp.ne.s32.totalorder %s34_s22, %s312_s8  ;;  %p318_p5 = scmp.lt.s32.totalorder %s312_s8, %s312_s8 }
   0xf   :  { %p319_p6 = por %p318_p5, %p317_p4 }
  0x11   :  { %p320_p7 = pnand %p319_p6, %p313_p3 }
  0x13   :  { %323 = shalt.err (!%p320_p7)
}
  0x14   :  { %s468_s9 = smov 64   ;;  %s469_s10 = smov 4  }
  0x15   :  { %39 = dma.hbm_to_vmem [thread:$0]  %s621_s1, 256, %s34_s22, [#allocation6], %s468_s9, %s468_s9, %s469_s10  }
  0x16   :  { %s324_s15 = scalar_lea.hbm %s623_s3, 128 }
  0x17   :  { %p325_p8 = scmp.ne.s32.totalorder %s623_s3, %s324_s15  ;;  %p328_p9 = scmp.lt.u32.totalorder %s324_s15, %s623_s3 }
  0x19   :  { %p330_p10 = pnand %p328_p9, %p325_p8 }
  0x1b   :  { %333 = shalt.err (!%p330_p10)
}
  0x1c   :  { %s334_s20 = scalar_lea.vmem %s512_s24, 128  ;;  %p339_p12 = scmp.lt.s32.totalorder %s512_s24, %s512_s24 }
  0x1d   :  { %p335_p11 = scmp.ne.s32.totalorder %s512_s24, %s334_s20  ;;  %p340_p13 = scmp.lt.s32.totalorder %s334_s20, %s334_s20 }
  0x1f   :  { %p341_p0 = por %p340_p13, %p339_p12 }
  0x21   :  { %p342_p1 = pnand %p341_p0, %p335_p11 }
  0x23   :  { %345 = shalt.err (!%p342_p1)
}
  0x24   :  { %61 = dma.hbm_to_vmem [thread:$0]  %s623_s3, 128, %s512_s24, [#allocation9], %s468_s9, %s468_s9, %s469_s10  }
  0x25   :  { %s470_s22 = smov [#allocation2]   ;;  %s471_s25 = smov [#allocation7]  }
  0x26   :  { %s21_s23 = sshll.u32 %s470_s22, 4  ;;  %s46_s26 = sshll.u32 %s471_s25, 4  ;;  %s22_s23 = int_to_ptr.vmem [resolvable:$true] %s21_s23  ;;  %s47_s26 = int_to_ptr.vmem [resolvable:$true] %s46_s26 }
  0x27   :  { %s346_s29 = scalar_lea.hbm %s620_s0, 128 }
  0x28   :  { %p347_p2 = scmp.ne.s32.totalorder %s620_s0, %s346_s29  ;;  %p350_p3 = scmp.lt.u32.totalorder %s346_s29, %s620_s0 }
  0x2a   :  { %p352_p4 = pnand %p350_p3, %p347_p2 }
  0x2c   :  { %355 = shalt.err (!%p352_p4)
}
  0x2d   :  { %s356_s3 = scalar_lea.vmem %s22_s23, 128  ;;  %p361_p6 = scmp.lt.s32.totalorder %s22_s23, %s22_s23 }
  0x2e   :  { %p357_p5 = scmp.ne.s32.totalorder %s22_s23, %s356_s3  ;;  %p362_p7 = scmp.lt.s32.totalorder %s356_s3, %s356_s3 }
  0x30   :  { %p363_p8 = por %p362_p7, %p361_p6 }
  0x32   :  { %p364_p9 = pnand %p363_p8, %p357_p5 }
  0x34   :  { %367 = shalt.err (!%p364_p9)
}
  0x35   :  { %27 = dma.hbm_to_vmem [thread:$0]  %s620_s0, 128, %s22_s23, [#allocation3], %s468_s9, %s468_s9, %s469_s10  }
  0x36   :  { %s368_s15 = scalar_lea.hbm %s622_s2, 16 }
  0x37   :  { %p369_p10 = scmp.ne.s32.totalorder %s622_s2, %s368_s15  ;;  %p372_p11 = scmp.lt.u32.totalorder %s368_s15, %s622_s2 }
  0x39   :  { %p374_p12 = pnand %p372_p11, %p369_p10 }
  0x3b   :  { %377 = shalt.err (!%p374_p12)
}
  0x3c   :  { %s378_s20 = scalar_lea.vmem %s47_s26, 16  ;;  %s382_s1 = scalar_lea.vmem %s47_s26, 32 }
  0x3d   :  { %p379_p13 = scmp.ne.s32.totalorder %s47_s26, %s378_s20  ;;  %p383_p0 = scmp.lt.s32.totalorder %s47_s26, %s47_s26 }
  0x3e   :  { %p384_p1 = scmp.lt.s32.totalorder %s382_s1, %s378_s20 }
  0x40   :  { %p385_p2 = por %p384_p1, %p383_p0 }
  0x42   :  { %p386_p3 = pnand %p385_p2, %p379_p13 }
  0x44   :  { %389 = shalt.err (!%p386_p3)
}
  0x45   :  { %49 = dma.hbm_to_vmem [thread:$0]  %s622_s2, 16, %s47_s26, [#allocation6]  }
  0x46   :  { %s472_s22 = smov [#allocation10]   ;;  %s473_s25 = smov [#allocation11]  }
  0x47   :  { %s68_s23 = sshll.u32 %s472_s22, 4  ;;  %s78_s27 = sshll.u32 %s473_s25, 4  ;;  %s69_s23 = int_to_ptr.vmem [resolvable:$true] %s68_s23  ;;  %s79_s27 = int_to_ptr.vmem [resolvable:$true] %s78_s27 }
  0x48   :  { %s390_s30 = scalar_lea.hbm %s624_s4, 16 }
  0x49   :  { %p391_p4 = scmp.ne.s32.totalorder %s624_s4, %s390_s30  ;;  %p394_p5 = scmp.lt.u32.totalorder %s390_s30, %s624_s4 }
  0x4b   :  { %p396_p6 = pnand %p394_p5, %p391_p4 }
  0x4d   :  { %399 = shalt.err (!%p396_p6)
}
  0x4e   :  { %s400_s2 = scalar_lea.vmem %s69_s23, 16  ;;  %s404_s26 = scalar_lea.vmem %s69_s23, 32 }
  0x4f   :  { %p401_p7 = scmp.ne.s32.totalorder %s69_s23, %s400_s2  ;;  %p405_p8 = scmp.lt.s32.totalorder %s69_s23, %s69_s23 }
  0x50   :  { %p406_p9 = scmp.lt.s32.totalorder %s404_s26, %s400_s2 }
  0x52   :  { %p407_p10 = por %p406_p9, %p405_p8 }
  0x54   :  { %p408_p11 = pnand %p407_p10, %p401_p7 }
  0x56   :  { %411 = shalt.err (!%p408_p11)
}
  0x57   :  { %71 = dma.hbm_to_vmem [thread:$0]  %s624_s4, 16, %s69_s23, [#allocation9]  }
  0x58   :  { %s412_s15 = scalar_lea.hbm %s625_s5, 16 }
  0x59   :  { %p413_p12 = scmp.ne.s32.totalorder %s625_s5, %s412_s15  ;;  %p416_p13 = scmp.lt.u32.totalorder %s412_s15, %s625_s5 }
  0x5b   :  { %p418_p0 = pnand %p416_p13, %p413_p12 }
  0x5d   :  { %421 = shalt.err (!%p418_p0)
}
  0x5e   :  { %s422_s20 = scalar_lea.vmem %s79_s27, 16  ;;  %s426_s1 = scalar_lea.vmem %s79_s27, 32 }
  0x5f   :  { %p423_p1 = scmp.ne.s32.totalorder %s79_s27, %s422_s20  ;;  %p427_p2 = scmp.lt.s32.totalorder %s79_s27, %s79_s27 }
  0x60   :  { %p428_p3 = scmp.lt.s32.totalorder %s426_s1, %s422_s20 }
  0x62   :  { %p429_p4 = por %p428_p3, %p427_p2 }
  0x64   :  { %p430_p5 = pnand %p429_p4, %p423_p1 }
  0x66   :  { %433 = shalt.err (!%p430_p5)
}
  0x67   :  { %81 = dma.hbm_to_vmem [thread:$0]  %s625_s5, 16, %s79_s27, [#allocation12]  }
  0x68   :  { %456 = dma.done.wait [#allocation3], 128  }
  0x69   :  { %457 = vsyncadd [#allocation3], 4294967168 }
  0x6a   :  { %458 = dma.done.wait [#allocation6], 272  }
  0x6b   :  { %459 = vsyncadd [#allocation6], 4294967024 }
  0x6c   :  { %460 = dma.done.wait [#allocation9], 144  }
  0x6d   :  { %461 = vsyncadd [#allocation9], 4294967152 }
  0x6e   :  { %462 = dma.done.wait [#allocation12], 16  }
  0x6f   :  { %463 = vsyncadd [#allocation12], 4294967280  ;;  %v474_v0 = vmov 0.0   ;;  %vm475_vm0 = vmmov 0   ;;  %v295_v1 = vld [vmem:[#allocation5] sm:$0xff]   ;;  %v296_v2 = vld [vmem:[#allocation5 + $0x8] sm:$0xff]  }
  0x70   :  { %276 = vmatprep.subr.bf16.mxu0 %v474_v0  ;;  %280 = vmatprep.mubr.msk.bf16.mxu0 %vm475_vm0, %v474_v0  ;;  %v297_v3 = vld [vmem:[#allocation2] sm:$0xff]   ;;  %vm131_vm1 = vcmask 261120   ;;  %v258_v5 = vld [vmem:[#allocation7] ss:$0 sm:$0xff]  ;;  %vm235_vm2 = vcmask 257024   ;;  %s476_s5 = smov [#allocation13]  }
  0x71   :  { %277 = vmatpush3.bf16.msra.mxu0 %v295_v1  ;;  %v270_v4 = vld [vmem:[#allocation8] sm:$0xff]   ;;  %v263_v35 = vld [vmem:[#allocation10] ss:$0 sm:$0xff]  ;;  %v264_v37 = vld [vmem:[#allocation11] ss:$0 sm:$0xff]  ;;  %s243_s21 = sshll.u32 %s476_s5, 4  ;;  %s244_s21 = int_to_ptr.vmem [resolvable:$true] %s243_s21 }
  0x72   :  { %278 = vmatprep.subr.bf16.mxu0 %v474_v0  ;;  %v271_v6 = vunpack.c.l.bf16 %v270_v4  ;;  %v272_v10 = vunpack.c.h.bf16 %v270_v4  ;;  %s434_s22 = scalar_lea.vmem %s244_s21, 128  ;;  %p439_p7 = scmp.lt.s32.totalorder %s244_s21, %s244_s21 }
  0x73   :  { %p435_p6 = scmp.ne.s32.totalorder %s244_s21, %s434_s22  ;;  %p440_p8 = scmp.lt.s32.totalorder %s434_s22, %s434_s22 }
  0x75   :  { %279 = vmatpush3.bf16.msra.mxu0 %v296_v2  ;;  %p441_p9 = por %p440_p8, %p439_p7 }
  0x77   :  { %p442_p10 = pnand %p441_p9, %p435_p6 }
  0x78   :  { %281 = vmatmul.mubr.msk.bf16.vlgmr.msra.gmra.mrb[0].mxu0 %vm131_vm1, %v297_v3 }
 0x14b   :  { %v169_v7 = vpop.f32.mrb[0].mxu0 }
 0x14c   :  { %v170_v8 = vadd.f32 %v258_v5, %v169_v7  ;;  %v282_v9 = vpop.f32.mrb[1].mxu0 }
 0x14d   :  { %v172_v11 = vpop.f32.mrb[2].mxu0 }
 0x14e   :  { %v173_v12 = vadd.f32 %v258_v5, %v172_v11  ;;  %v283_v13 = vpop.f32.mrb[3].mxu0  ;;  %v180_v14 = vadd.f32 %v271_v6, %v170_v8 }
 0x150   :  { %v182_v15 = vsel %vm131_vm1, %v180_v14, 0.0  ;;  %v181_v16 = vadd.f32 %v272_v10, %v173_v12 }
 0x151   :  { %183 = vadd.xlane.f32.xlu0 %v182_v15 }
 0x152   :  { %v185_v17 = vsel %vm131_vm1, %v181_v16, 0.0 }
 0x155   :  { %186 = vadd.xlane.f32.xlu0 %v185_v17 }
 0x1de   :  { %v184_v18 = vpop.xlane.xlu0 %183 }
 0x1df   :  { %v189_v19 = vmul.f32 0.03125, %v184_v18 }
 0x1e1   :  { %v191_v20 = vsub.f32 %v180_v14, %v189_v19 }
 0x1e2   :  { %v187_v21 = vpop.xlane.xlu0 %186 }
 0x1e3   :  { %v190_v22 = vmul.f32 0.03125, %v187_v21  ;;  %v193_v23 = vmul.f32 %v191_v20, %v191_v20 }
 0x1e5   :  { %v192_v24 = vsub.f32 %v181_v16, %v190_v22  ;;  %v195_v25 = vsel %vm131_vm1, %v193_v23, 0.0 }
 0x1e6   :  { %196 = vadd.xlane.f32.xlu1 %v195_v25 }
 0x1e7   :  { %v194_v26 = vmul.f32 %v192_v24, %v192_v24 }
 0x1e9   :  { %v198_v27 = vsel %vm131_vm1, %v194_v26, 0.0 }
 0x1ea   :  { %199 = vadd.xlane.f32.xlu1 %v198_v27 }
 0x273   :  { %v197_v28 = vpop.xlane.xlu1 %196 }
 0x274   :  { %v201_v29 = vmul.f32 0.03125, %v197_v28 }
 0x276   :  { %v203_v30 = vadd.f32 1e-12, %v201_v29 }
 0x277   :  { %v200_v31 = vpop.xlane.xlu1 %199 }
 0x278   :  { %298 = vrsqrt.f32 %v203_v30  ;;  %v202_v32 = vmul.f32 0.03125, %v200_v31 }
 0x27a   :  { %v204_v33 = vadd.f32 1e-12, %v202_v32 }
 0x27c   :  { %300 = vrsqrt.f32 %v204_v33 }
 0x282   :  { %v299_v34 = vpop.eup %298 }
 0x283   :  { %v207_v36 = vmul.f32 %v299_v34, %v191_v20 }
 0x285   :  { %v216_v38 = vmul.f32 %v263_v35, %v207_v36 }
 0x286   :  { %v301_v39 = vpop.eup %300 }
 0x287   :  { %v208_v40 = vmul.f32 %v301_v39, %v192_v24  ;;  %v225_v41 = vadd.f32 %v264_v37, %v216_v38 }
 0x289   :  { %v217_v42 = vmul.f32 %v263_v35, %v208_v40  ;;  %v267_v43 = vpack.c.bf16 %v225_v41, %v225_v41 }
 0x28b   :  { %v226_v44 = vadd.f32 %v264_v37, %v217_v42  ;;  %236 = vst.msk [vmem:[#allocation13] sm:$0xf] %vm235_vm2, %v267_v43 }
 0x28d   :  { %v268_v45 = vpack.c.bf16 %v226_v44, %v226_v44 }
 0x28f   :  { %237 = vst.msk [vmem:[#allocation13 + $0x4] sm:$0xf] %vm235_vm2, %v268_v45 }
 0x290   :  { %445 = shalt.err (!%p442_p10)
}
 0x291   :  { %s446_s27 = scalar_lea.hbm %s626_s6, 128 }
 0x292   :  { %p447_p11 = scmp.ne.s32.totalorder %s626_s6, %s446_s27  ;;  %p450_p12 = scmp.lt.u32.totalorder %s446_s27, %s626_s6 }
 0x294   :  { %p452_p13 = pnand %p450_p12, %p447_p11 }
 0x296   :  { %455 = shalt.err (!%p452_p13)
}
 0x297   :  { %249 = dma.vmem_to_hbm [thread:$0]  %s244_s21, 128, %s626_s6, [#allocation4], %s468_s9, %s468_s9, %s469_s10  }
 0x298   :  { %464 = dma.done.wait [#allocation4], 128  }
 0x299   :  { %465 = vsyncadd [#allocation4], 4294967168 }
 0x29a   :  { %253 = vsyncpa [#allocation3], 1 }
 0x29b   :  { %254 = vsyncpa [#allocation6], 1 }
 0x29c   :  { %255 = vsyncpa [#allocation9], 1 }
 0x29d   :  { %256 = vsyncpa [#allocation12], 1 }
 0x29e   :  { %257 = vsyncpa [#allocation4], 1 }

// kernel: bert_classifier_forward.12
= control target key start
LH: loop header
LB: loop body
LE: loop exit
PB: predicated region body
PF: predicated region fallthrough
CT: control target
= control target key end

     0   :  { %8 = vsyncpa [#allocation3], 0  ;;  %s376_s0 = inlined_call_operand.hbm [shape: bf16[16,32], index: 0, kind: input, shape index: {}]   ;;  %s377_s1 = inlined_call_operand.hbm [shape: bf16[32,96], index: 1, kind: input, shape index: {}]   ;;  %s378_s2 = inlined_call_operand.hbm [shape: f32[1,96], index: 2, kind: input, shape index: {}]   ;;  %s379_s3 = inlined_call_operand.hbm [shape: bf16[16,96], index: 3, kind: output, shape index: {}]  }
   0x1   :  { %9 = vsyncpa [#allocation6], 0 }
   0x2   :  { %10 = vsyncpa [#allocation4], 0  ;;  %s284_s12 = smov [#allocation5]   ;;  %s285_s14 = smov [#allocation2]  }
   0x3   :  { %s28_s13 = sshll.u32 %s284_s12, 4  ;;  %s16_s15 = sshll.u32 %s285_s14, 4  ;;  %s29_s13 = int_to_ptr.vmem [resolvable:$true] %s28_s13  ;;  %s312_s15 = int_to_ptr.vmem [resolvable:$true] %s16_s15 }
   0x4   :  { %s190_s18 = scalar_lea.hbm %s377_s1, 256 }
   0x5   :  { %p191_p0 = scmp.ne.s32.totalorder %s377_s1, %s190_s18  ;;  %p194_p1 = scmp.lt.u32.totalorder %s190_s18, %s377_s1 }
   0x7   :  { %p196_p2 = pnand %p194_p1, %p191_p0 }
   0x9   :  { %199 = shalt.err (!%p196_p2)
}
   0xa   :  { %s200_s23 = scalar_lea.vmem %s29_s13, 256  ;;  %p205_p4 = scmp.lt.s32.totalorder %s29_s13, %s29_s13 }
   0xb   :  { %p201_p3 = scmp.ne.s32.totalorder %s29_s13, %s200_s23  ;;  %p206_p5 = scmp.lt.s32.totalorder %s200_s23, %s200_s23 }
   0xd   :  { %p207_p6 = por %p206_p5, %p205_p4 }
   0xf   :  { %p208_p7 = pnand %p207_p6, %p201_p3 }
  0x11   :  { %211 = shalt.err (!%p208_p7)
}
  0x12   :  { %s286_s24 = smov 64   ;;  %s287_s25 = smov 4  }
  0x13   :  { %34 = dma.hbm_to_vmem [thread:$0]  %s377_s1, 256, %s29_s13, [#allocation6], %s286_s24, %s286_s24, %s287_s25  }
  0x14   :  { %s212_s30 = scalar_lea.hbm %s376_s0, 128 }
  0x15   :  { %p213_p8 = scmp.ne.s32.totalorder %s376_s0, %s212_s30  ;;  %p216_p9 = scmp.lt.u32.totalorder %s212_s30, %s376_s0 }
  0x17   :  { %p218_p10 = pnand %p216_p9, %p213_p8 }
  0x19   :  { %221 = shalt.err (!%p218_p10)
}
  0x1a   :  { %s222_s8 = scalar_lea.vmem %s312_s15, 128  ;;  %p227_p12 = scmp.lt.s32.totalorder %s312_s15, %s312_s15 }
  0x1b   :  { %p223_p11 = scmp.ne.s32.totalorder %s312_s15, %s222_s8  ;;  %p228_p13 = scmp.lt.s32.totalorder %s222_s8, %s222_s8 }
  0x1d   :  { %p229_p0 = por %p228_p13, %p227_p12 }
  0x1f   :  { %p230_p1 = pnand %p229_p0, %p223_p11 }
  0x21   :  { %233 = shalt.err (!%p230_p1)
}
  0x22   :  { %22 = dma.hbm_to_vmem [thread:$0]  %s376_s0, 128, %s312_s15, [#allocation3], %s286_s24, %s286_s24, %s287_s25  }
  0x23   :  { %s288_s10 = smov [#allocation7]   ;;  %s234_s14 = scalar_lea.hbm %s378_s2, 16 }
  0x24   :  { %s41_s11 = sshll.u32 %s288_s10, 4  ;;  %p235_p2 = scmp.ne.s32.totalorder %s378_s2, %s234_s14  ;;  %s42_s11 = int_to_ptr.vmem [resolvable:$true] %s41_s11 }
  0x25   :  { %p238_p3 = scmp.lt.u32.totalorder %s234_s14, %s378_s2 }
  0x27   :  { %p240_p4 = pnand %p238_p3, %p235_p2 }
  0x29   :  { %243 = shalt.err (!%p240_p4)
}
  0x2a   :  { %s244_s20 = scalar_lea.vmem %s42_s11, 16  ;;  %s248_s0 = scalar_lea.vmem %s42_s11, 32 }
  0x2b   :  { %p245_p5 = scmp.ne.s32.totalorder %s42_s11, %s244_s20  ;;  %p249_p6 = scmp.lt.s32.totalorder %s42_s11, %s42_s11 }
  0x2c   :  { %p250_p7 = scmp.lt.s32.totalorder %s248_s0, %s244_s20 }
  0x2e   :  { %p251_p8 = por %p250_p7, %p249_p6 }
  0x30   :  { %p252_p9 = pnand %p251_p8, %p245_p5 }
  0x32   :  { %255 = shalt.err (!%p252_p9)
}
  0x33   :  { %44 = dma.hbm_to_vmem [thread:$0]  %s378_s2, 16, %s42_s11, [#allocation6]  }
  0x34   :  { %278 = dma.done.wait [#allocation3], 128  }
  0x35   :  { %279 = vsyncadd [#allocation3], 4294967168 }
  0x36   :  { %280 = dma.done.wait [#allocation6], 272  }
  0x37   :  { %281 = vsyncadd [#allocation6], 4294967024  ;;  %v289_v0 = vmov 0.0   ;;  %vm290_vm0 = vmmov 0   ;;  %v187_v1 = vld [vmem:[#allocation5] sm:$0xff]   ;;  %v188_v2 = vld [vmem:[#allocation5 + $0x8] sm:$0xff]  }
  0x38   :  { %171 = vmatprep.subr.bf16.mxu0 %v289_v0  ;;  %175 = vmatprep.mubr.msk.bf16.mxu0 %vm290_vm0, %v289_v0  ;;  %v189_v3 = vld [vmem:[#allocation2] sm:$0xff]   ;;  %vm85_vm1 = vcmask 261120   ;;  %v159_v4 = vld [vmem:[#allocation7] ss:$0 sm:$0xff]  ;;  %vm138_vm2 = vcmask 781312   ;;  %s291_s2 = smov [#allocation8]  }
  0x39   :  { %172 = vmatpush3.bf16.msra.mxu0 %v187_v1  ;;  %s146_s22 = sshll.u32 %s291_s2, 4  ;;  %s147_s22 = int_to_ptr.vmem [resolvable:$true] %s146_s22 }
  0x3a   :  { %173 = vmatprep.subr.bf16.mxu0 %v289_v0  ;;  %s256_s23 = scalar_lea.vmem %s147_s22, 128  ;;  %p261_p11 = scmp.lt.s32.totalorder %s147_s22, %s147_s22 }
  0x3b   :  { %p257_p10 = scmp.ne.s32.totalorder %s147_s22, %s256_s23  ;;  %p262_p12 = scmp.lt.s32.totalorder %s256_s23, %s256_s23 }
  0x3d   :  { %174 = vmatpush3.bf16.msra.mxu0 %v188_v2  ;;  %p263_p13 = por %p262_p12, %p261_p11 }
  0x3f   :  { %p264_p0 = pnand %p263_p13, %p257_p10 }
  0x40   :  { %176 = vmatmul.mubr.msk.bf16.vlgmr.msra.gmra.mrb[0].mxu0 %vm85_vm1, %v189_v3 }
 0x113   :  { %v123_v5 = vpop.f32.mrb[0].mxu0 }
 0x114   :  { %v124_v6 = vadd.f32 %v159_v4, %v123_v5  ;;  %v177_v7 = vpop.f32.mrb[1].mxu0 }
 0x115   :  { %v126_v8 = vpop.f32.mrb[2].mxu0 }
 0x116   :  { %v166_v9 = vpack.c.bf16 %v124_v6, %v124_v6  ;;  %v127_v10 = vadd.f32 %v159_v4, %v126_v8  ;;  %v178_v11 = vpop.f32.mrb[3].mxu0 }
 0x118   :  { %v167_v12 = vpack.c.bf16 %v127_v10, %v127_v10  ;;  %139 = vst.msk [vmem:[#allocation8] sm:$0xf] %vm138_vm2, %v166_v9 }
 0x11a   :  { %140 = vst.msk [vmem:[#allocation8 + $0x4] sm:$0xf] %vm138_vm2, %v167_v12 }
 0x11b   :  { %267 = shalt.err (!%p264_p0)
}
 0x11c   :  { %s268_s28 = scalar_lea.hbm %s379_s3, 128 }
 0x11d   :  { %p269_p1 = scmp.ne.s32.totalorder %s379_s3, %s268_s28  ;;  %p272_p2 = scmp.lt.u32.totalorder %s268_s28, %s379_s3 }
 0x11f   :  { %p274_p3 = pnand %p272_p2, %p269_p1 }
 0x121   :  { %277 = shalt.err (!%p274_p3)
}
 0x122   :  { %152 = dma.vmem_to_hbm [thread:$0]  %s147_s22, 128, %s379_s3, [#allocation4], %s286_s24, %s286_s24, %s287_s25  }
 0x123   :  { %282 = dma.done.wait [#allocation4], 128  }
 0x124   :  { %283 = vsyncadd [#allocation4], 4294967168 }
 0x125   :  { %156 = vsyncpa [#allocation3], 1 }
 0x126   :  { %157 = vsyncpa [#allocation6], 1 }
 0x127   :  { %158 = vsyncpa [#allocation4], 1 }

// kernel: bert_classifier_forward.11
= control target key start
LH: loop header
LB: loop body
LE: loop exit
PB: predicated region body
PF: predicated region fallthrough
CT: control target
= control target key end

     0   :  { %8 = vsyncpa [#allocation3], 0  ;;  %s328_s0 = inlined_call_operand.hbm [shape: f32[16,32], index: 0, kind: input, shape index: {}]   ;;  %s329_s1 = inlined_call_operand.hbm [shape: f32[1,32], index: 1, kind: input, shape index: {}]   ;;  %s330_s2 = inlined_call_operand.hbm [shape: f32[1,32], index: 2, kind: input, shape index: {}]   ;;  %s331_s3 = inlined_call_operand.hbm [shape: bf16[16,32], index: 3, kind: output, shape index: {}]  }
   0x1   :  { %9 = vsyncpa [#allocation6], 0 }
   0x2   :  { %10 = vsyncpa [#allocation4], 0  ;;  %s241_s12 = smov [#allocation5]   ;;  %s242_s14 = smov [#allocation2]  }
   0x3   :  { %s29_s13 = sshll.u32 %s241_s12, 4  ;;  %s16_s15 = sshll.u32 %s242_s14, 4  ;;  %s30_s13 = int_to_ptr.vmem [resolvable:$true] %s29_s13  ;;  %s269_s15 = int_to_ptr.vmem [resolvable:$true] %s16_s15 }
   0x4   :  { %s147_s18 = scalar_lea.hbm %s329_s1, 16 }
   0x5   :  { %p148_p0 = scmp.ne.s32.totalorder %s329_s1, %s147_s18  ;;  %p151_p1 = scmp.lt.u32.totalorder %s147_s18, %s329_s1 }
   0x7   :  { %p153_p2 = pnand %p151_p1, %p148_p0 }
   0x9   :  { %156 = shalt.err (!%p153_p2)
}
   0xa   :  { %s157_s23 = scalar_lea.vmem %s30_s13, 16  ;;  %s161_s24 = scalar_lea.vmem %s30_s13, 32 }
   0xb   :  { %p158_p3 = scmp.ne.s32.totalorder %s30_s13, %s157_s23  ;;  %p162_p4 = scmp.lt.s32.totalorder %s30_s13, %s30_s13 }
   0xc   :  { %p163_p5 = scmp.lt.s32.totalorder %s161_s24, %s157_s23 }
   0xe   :  { %p164_p6 = por %p163_p5, %p162_p4 }
  0x10   :  { %p165_p7 = pnand %p164_p6, %p158_p3 }
  0x12   :  { %168 = shalt.err (!%p165_p7)
}
  0x13   :  { %32 = dma.hbm_to_vmem [thread:$0]  %s329_s1, 16, %s30_s13, [#allocation6]  }
  0x14   :  { %s169_s29 = scalar_lea.hbm %s328_s0, 256 }
  0x15   :  { %p170_p8 = scmp.ne.s32.totalorder %s328_s0, %s169_s29  ;;  %p173_p9 = scmp.lt.u32.totalorder %s169_s29, %s328_s0 }
  0x17   :  { %p175_p10 = pnand %p173_p9, %p170_p8 }
  0x19   :  { %178 = shalt.err (!%p175_p10)
}
  0x1a   :  { %s179_s7 = scalar_lea.vmem %s269_s15, 256  ;;  %p184_p12 = scmp.lt.s32.totalorder %s269_s15, %s269_s15 }
  0x1b   :  { %p180_p11 = scmp.ne.s32.totalorder %s269_s15, %s179_s7  ;;  %p185_p13 = scmp.lt.s32.totalorder %s179_s7, %s179_s7 }
  0x1d   :  { %p186_p0 = por %p185_p13, %p184_p12 }
  0x1f   :  { %p187_p1 = pnand %p186_p0, %p180_p11 }
  0x21   :  { %190 = shalt.err (!%p187_p1)
}
  0x22   :  { %s243_s1 = smov 128   ;;  %s244_s8 = smov 8  }
  0x23   :  { %22 = dma.hbm_to_vmem [thread:$0]  %s328_s0, 256, %s269_s15, [#allocation3], %s243_s1, %s243_s1, %s244_s8  }
  0x24   :  { %s245_s11 = smov [#allocation7]   ;;  %s191_s16 = scalar_lea.hbm %s330_s2, 16 }
  0x25   :  { %s39_s12 = sshll.u32 %s245_s11, 4  ;;  %p192_p2 = scmp.ne.s32.totalorder %s330_s2, %s191_s16  ;;  %s40_s12 = int_to_ptr.vmem [resolvable:$true] %s39_s12 }
  0x26   :  { %p195_p3 = scmp.lt.u32.totalorder %s191_s16, %s330_s2 }
  0x28   :  { %p197_p4 = pnand %p195_p3, %p192_p2 }
  0x2a   :  { %200 = shalt.err (!%p197_p4)
}
  0x2b   :  { %s201_s21 = scalar_lea.vmem %s40_s12, 16  ;;  %s205_s0 = scalar_lea.vmem %s40_s12, 32 }
  0x2c   :  { %p202_p5 = scmp.ne.s32.totalorder %s40_s12, %s201_s21  ;;  %p206_p6 = scmp.lt.s32.totalorder %s40_s12, %s40_s12 }
  0x2d   :  { %p207_p7 = scmp.lt.s32.totalorder %s205_s0, %s201_s21 }
  0x2f   :  { %p208_p8 = por %p207_p7, %p206_p6 }
  0x31   :  { %p209_p9 = pnand %p208_p8, %p202_p5 }
  0x33   :  { %212 = shalt.err (!%p209_p9)
}
  0x34   :  { %42 = dma.hbm_to_vmem [thread:$0]  %s330_s2, 16, %s40_s12, [#allocation6]  }
  0x35   :  { %235 = dma.done.wait [#allocation3], 256  }
  0x36   :  { %236 = vsyncadd [#allocation3], 4294967040 }
  0x37   :  { %237 = dma.done.wait [#allocation6], 32  }
  0x38   :  { %238 = vsyncadd [#allocation6], 4294967264  ;;  %vm54_vm0 = vcmask 261120   ;;  %v52_v0 = vld [vmem:[#allocation2] sm:$0xff]  ;;  %v53_v1 = vld [vmem:[#allocation2 + $0x8] sm:$0xff]  ;;  %vm108_vm1 = vcmask 257024  }
  0x39   :  { %v55_v2 = vsel %vm54_vm0, %v52_v0, 0.0  ;;  %v58_v3 = vsel %vm54_vm0, %v53_v1, 0.0  ;;  %v129_v21 = vld [vmem:[#allocation5] ss:$0 sm:$0xff]  ;;  %v130_v23 = vld [vmem:[#allocation7] ss:$0 sm:$0xff] }
  0x3a   :  { %56 = vadd.xlane.f32.xlu0 %v55_v2  ;;  %s246_s2 = smov [#allocation8]  }
  0x3b   :  { %s116_s23 = sshll.u32 %s246_s2, 4  ;;  %s117_s23 = int_to_ptr.vmem [resolvable:$true] %s116_s23 }
  0x3c   :  { %s213_s24 = scalar_lea.vmem %s117_s23, 128  ;;  %p218_p11 = scmp.lt.s32.totalorder %s117_s23, %s117_s23 }
  0x3d   :  { %p214_p10 = scmp.ne.s32.totalorder %s117_s23, %s213_s24  ;;  %p219_p12 = scmp.lt.s32.totalorder %s213_s24, %s213_s24 }
  0x3e   :  { %59 = vadd.xlane.f32.xlu0 %v58_v3 }
  0x3f   :  { %p220_p13 = por %p219_p12, %p218_p11 }
  0x41   :  { %p221_p0 = pnand %p220_p13, %p214_p10 }
  0xc7   :  { %v57_v4 = vpop.xlane.xlu0 %56 }
  0xc8   :  { %v62_v5 = vmul.f32 0.03125, %v57_v4 }
  0xca   :  { %v64_v6 = vsub.f32 %v52_v0, %v62_v5 }
  0xcb   :  { %v60_v7 = vpop.xlane.xlu0 %59 }
  0xcc   :  { %v63_v8 = vmul.f32 0.03125, %v60_v7  ;;  %v66_v9 = vmul.f32 %v64_v6, %v64_v6 }
  0xce   :  { %v65_v10 = vsub.f32 %v53_v1, %v63_v8  ;;  %v68_v11 = vsel %vm54_vm0, %v66_v9, 0.0 }
  0xcf   :  { %69 = vadd.xlane.f32.xlu1 %v68_v11 }
  0xd0   :  { %v67_v12 = vmul.f32 %v65_v10, %v65_v10 }
  0xd2   :  { %v71_v13 = vsel %vm54_vm0, %v67_v12, 0.0 }
  0xd3   :  { %72 = vadd.xlane.f32.xlu1 %v71_v13 }
 0x15c   :  { %v70_v14 = vpop.xlane.xlu1 %69 }
 0x15d   :  { %v74_v15 = vmul.f32 0.03125, %v70_v14 }
 0x15f   :  { %v76_v16 = vadd.f32 1e-12, %v74_v15 }
 0x160   :  { %v73_v17 = vpop.xlane.xlu1 %72 }
 0x161   :  { %143 = vrsqrt.f32 %v76_v16  ;;  %v75_v18 = vmul.f32 0.03125, %v73_v17 }
 0x163   :  { %v77_v19 = vadd.f32 1e-12, %v75_v18 }
 0x165   :  { %145 = vrsqrt.f32 %v77_v19 }
 0x16b   :  { %v144_v20 = vpop.eup %143 }
 0x16c   :  { %v80_v22 = vmul.f32 %v144_v20, %v64_v6 }
 0x16e   :  { %v89_v24 = vmul.f32 %v129_v21, %v80_v22 }
 0x16f   :  { %v146_v25 = vpop.eup %145 }
 0x170   :  { %v81_v26 = vmul.f32 %v146_v25, %v65_v10  ;;  %v98_v27 = vadd.f32 %v130_v23, %v89_v24 }
 0x172   :  { %v90_v28 = vmul.f32 %v129_v21, %v81_v26  ;;  %v133_v29 = vpack.c.bf16 %v98_v27, %v98_v27 }
 0x174   :  { %v99_v30 = vadd.f32 %v130_v23, %v90_v28  ;;  %109 = vst.msk [vmem:[#allocation8] sm:$0xf] %vm108_vm1, %v133_v29 }
 0x176   :  { %v134_v31 = vpack.c.bf16 %v99_v30, %v99_v30 }
 0x178   :  { %110 = vst.msk [vmem:[#allocation8 + $0x4] sm:$0xf] %vm108_vm1, %v134_v31 }
 0x179   :  { %224 = shalt.err (!%p221_p0)
}
 0x17a   :  { %s225_s27 = scalar_lea.hbm %s331_s3, 128 }
 0x17b   :  { %p226_p1 = scmp.ne.s32.totalorder %s331_s3, %s225_s27  ;;  %p229_p2 = scmp.lt.u32.totalorder %s225_s27, %s331_s3 }
 0x17d   :  { %p231_p3 = pnand %p229_p2, %p226_p1 }
 0x17f   :  { %234 = shalt.err (!%p231_p3)
}
 0x180   :  { %s247_s5 = smov 64   ;;  %s248_s6 = smov 4  }
 0x181   :  { %122 = dma.vmem_to_hbm [thread:$0]  %s117_s23, 128, %s331_s3, [#allocation4], %s247_s5, %s247_s5, %s248_s6  }
 0x182   :  { %239 = dma.done.wait [#allocation4], 128  }
 0x183   :  { %240 = vsyncadd [#allocation4], 4294967168 }
 0x184   :  { %126 = vsyncpa [#allocation3], 1 }
 0x185   :  { %127 = vsyncpa [#allocation6], 1 }
 0x186   :  { %128 = vsyncpa [#allocation4], 1 }

// kernel: bert_classifier_forward.13
= control target key start
LH: loop header
LB: loop body
LE: loop exit
PB: predicated region body
PF: predicated region fallthrough
CT: control target
= control target key end

     0   :  { %7 = vsyncpa [#allocation3], 0  ;;  %s1430_s0 = inlined_call_operand.hbm [shape: bf16[2,8,96], index: 0, kind: input, shape index: {}]   ;;  %s1431_s1 = inlined_call_operand.hbm [shape: f32[2,1,8], index: 1, kind: input, shape index: {}]   ;;  %s1432_s2 = inlined_call_operand.hbm [shape: bf16[2,8,32], index: 2, kind: output, shape index: {}]  }
   0x1   :  { %9 = vsyncpa [#allocation3 + $0x1], 0 }
   0x2   :  { %10 = vsyncpa [#allocation6], 0 }
   0x3   :  { %12 = vsyncpa [#allocation6 + $0x1], 0 }
   0x4   :  { %13 = vsyncpa [#allocation4], 0 }
   0x5   :  { %15 = vsyncpa [#allocation4 + $0x1], 0  ;;  %s1140_s9 = smov 0   ;;  %s1142_s10 = smov 0  }
   0x6   :  { %s1144_s11 = smov 0   ;;  %s1146_s12 = smov 0  }
   0x7 LB: > { %s1161_s13 = sadd.s32 4294967295, %s1104_s12   ;;  %s791_s14 = sadd.s32 4294967294, %s1104_s12   ;;  %s1104_s12 = sphi %s1146_s12, %s1451_s12   ;;  %s1100_s11 = sphi %s1144_s11, %s1450_s11   ;;  %s1096_s10 = sphi %s1142_s10, %s1449_s10   ;;  %s1092_s9 = sphi %s1140_s9, %s1448_s9  }
   0x8   : > { %s1165_s15 = sadd.s32 1, %s1104_s12   ;;  %s28_s16 = sadd.s32 1, %s1100_s11 }
   0x9   : > { %s25_s17 = ssub.s32 %s1104_s12, %s1165_s15  ;;  %p35_p0 = scmp.ne.s32.totalorder %s1100_s11, %s1096_s10 }
   0xa   : > { %p26_p1 = scmp.eq.s32.totalorder %s25_s17, 0  ;;  %p36_p2 = scmp.eq.s32.totalorder %s1104_s12, 0 }
   0xb   : > { %p41_p3 = scmp.ne.s32.totalorder %s1096_s10, %s1092_s9  ;;  %p42_p4 = scmp.eq.s32.totalorder %s1161_s13, 0 }
   0xc   : > { %s1177_s18 = scalar_select %p26_p1, %s1100_s11, %s28_s16  }
   0xd   : > { %p1179_p5 = por %p36_p2, %p35_p0  ;;  %p1183_p6 = por %p42_p4, %p41_p3 }
   0xe   : > { %p91_p7 = scmp.eq.s32.totalorder %s1161_s13, 1  ;;  %p97_p8 = scmp.eq.s32.totalorder %s791_s14, 1 }
   0xf   : > { %s1436_s20 = scalar_select %p1183_p6, 1, 0 }
  0x10   : > { %p904_p10 = scmp.lt.s32.totalorder %s1104_s12, 2  ;;  %p1190_p11 = por %p91_p7, %p35_p0 }
  0x11   : > { %p1194_p12 = por %p97_p8, %p41_p3  ;;  %s1199_s23 = sand.u32 1, %s1100_s11  }
  0x12   : > { %s1437_s21 = scalar_select %p1190_p11, 1, 0 }
  0x13   : > { %s1438_s22 = scalar_select %p1194_p12, 1, 0 }
  0x14   : > { %s795_s24 = sshll.u32 %s1104_s12, 6  ;;  %s794_s25 = sshll.u32 %s1199_s23, 2 }
  0x15   : > { %s1206_s28 = scalar_lea.hbm %s1430_s0, %s795_s24  ;;  %s121_s29 = scalar_lea.vmem [#allocation2], %s794_s25 }
  0x16   : > { %s128_s30 = sshll.u32 %s121_s29, 4  ;;  %p1210_p13 = pnand %p904_p10, %p1179_p5  ;;  %s1214_s30 = int_to_ptr.vmem [resolvable:$true] %s128_s30 }
  0x17   : > { %s118_s4 = scalar_lea.sflag [#allocation3], %s1199_s23  ;;  %s974_s5 = scalar_lea.hbm %s1206_s28, 64 }
  0x18   : > { %p975_p2 = scmp.ne.s32.totalorder %s1206_s28, %s974_s5  ;;  %p976_p3 = pneg %p1210_p13 }
  0x19   : > { %s979_s8 = scalar_lea.hbm %s1430_s0, 128  ;;  %p980_p5 = scmp.lt.u32.totalorder %s1206_s28, %s1430_s0 }
  0x1a   : > { %p977_p4 = pnand %p976_p3, %p975_p2  ;;  %p981_p8 = scmp.lt.u32.totalorder %s979_s8, %s974_s5 }
  0x1b   : > { %p983_p9 = scmp.lt.u32.totalorder %s974_s5, %s1206_s28 }
  0x1c   : > { %p978_p7 = pneg %p977_p4  ;;  %p982_p10 = por %p981_p8, %p980_p5 }
  0x1e   : > { %p984_p0 = por %p983_p9, %p982_p10 }
  0x20   : > { %p985_p1 = pnand %p984_p0, %p978_p7 }
  0x22   : > { %988 = shalt.err (!%p985_p1)
}
  0x23   : > { %s989_s17 = scalar_lea.vmem %s1214_s30, 64  ;;  %s1106_s19 = smov [#allocation2]  }
  0x24   : > { %p990_p2 = scmp.ne.s32.totalorder %s1214_s30, %s989_s17  ;;  %s994_s24 = sshll.u32 %s1106_s19, 4  ;;  %s995_s24 = int_to_ptr.vmem [resolvable:$false] %s994_s24 }
  0x25   : > { %s996_s25 = scalar_lea.vmem %s995_s24, 128  ;;  %p997_p11 = scmp.lt.s32.totalorder %s1214_s30, %s995_s24 }
  0x26   : > { %p992_p4 = pnand %p990_p2, %p976_p3  ;;  %p998_p5 = scmp.lt.s32.totalorder %s996_s25, %s989_s17 }
  0x28   : > { %p993_p12 = pneg %p992_p4  ;;  %p999_p8 = por %p998_p5, %p997_p11 }
  0x2a   : > { %p1000_p9 = pnand %p999_p8, %p993_p12 }
  0x2c   : > { %1003 = shalt.err (!%p1000_p9)
}
  0x2d   : > { %896 = dma.hbm_to_vmem [thread:$0]  (!%p1210_p13), %s1206_s28, 64, %s1214_s30, %s118_s4  }
  0x2e   : > { %p1440_p0 = scmp.lt.s32.totalorder %s1104_s12, 3  ;;  %p1441_p1 = scmp.ge.s32.totalorder %s1104_s12, 1 }
  0x2f   : > { %s796_s27 = sshll.u32 %s1104_s12, 4  ;;  %s138_s7 = scalar_lea.vmem [#allocation5], %s1199_s23 }
  0x30   : > { %p1248_p7 = pnand %p1441_p1, %p1440_p0  ;;  %s1256_s6 = scalar_lea.hbm %s1431_s1, %s796_s27 }
  0x31   : > { %s145_s8 = sshll.u32 %s138_s7, 4  ;;  %s136_s28 = scalar_lea.sflag [#allocation6], %s1199_s23  ;;  %s146_s8 = int_to_ptr.vmem [resolvable:$true] %s145_s8 }
  0x32   : > { %s1442_s26 = scalar_select %p1248_p7, 1, 0 }
  0x33   : > { %s1004_s30 = scalar_lea.hbm %s1256_s6, 16  ;;  %s1009_s16 = scalar_lea.hbm %s1431_s1, 32 }
  0x34   : > { %p1005_p11 = scmp.ne.s32.totalorder %s1256_s6, %s1004_s30  ;;  %p1010_p2 = scmp.lt.u32.totalorder %s1256_s6, %s1431_s1 }
  0x35   : > { %p1011_p4 = scmp.lt.u32.totalorder %s1009_s16, %s1004_s30  ;;  %p1013_p8 = scmp.lt.u32.totalorder %s1004_s30, %s1256_s6 }
  0x36   : > { %p1007_p12 = pnand %p1005_p11, %p976_p3 }
  0x37   : > { %p1012_p5 = por %p1011_p4, %p1010_p2 }
  0x38   : > { %p1008_p10 = pneg %p1007_p12 }
  0x39   : > { %p1014_p9 = por %p1013_p8, %p1012_p5 }
  0x3b   : > { %p1015_p0 = pnand %p1014_p9, %p1008_p10 }
  0x3d   : > { %1018 = shalt.err (!%p1015_p0)
}
  0x3e   : > { %s1019_s23 = scalar_lea.vmem %s146_s8, 16  ;;  %s1107_s24 = smov [#allocation5]  }
  0x3f   : > { %p1020_p1 = scmp.ne.s32.totalorder %s146_s8, %s1019_s23  ;;  %s1024_s25 = sshll.u32 %s1107_s24, 4  ;;  %s1025_s25 = int_to_ptr.vmem [resolvable:$false] %s1024_s25 }
  0x40   : > { %s1026_s27 = scalar_lea.vmem %s1025_s25, 32  ;;  %p1027_p6 = scmp.lt.s32.totalorder %s146_s8, %s1025_s25 }
  0x41   : > { %p1022_p11 = pnand %p1020_p1, %p976_p3  ;;  %p1028_p7 = scmp.lt.s32.totalorder %s1026_s27, %s1019_s23 }
  0x43   : > { %p1023_p12 = pneg %p1022_p11  ;;  %p1029_p2 = por %p1028_p7, %p1027_p6 }
  0x45   : > { %p1030_p4 = pnand %p1029_p2, %p1023_p12 }
  0x47   : > { %1033 = shalt.err (!%p1030_p4)
}
  0x48   : > { %899 = dma.hbm_to_vmem [thread:$0]  (!%p1210_p13), %s1256_s6, 16, %s146_s8, %s136_s28  }
  0x49   : > { %p1443_p10 = scmp.ne.s32.totalorder %s1442_s26, 0 }
  0x4a   : > { %s1282_s29 = sand.u32 (!%p1443_p10), 1, %s1096_s10   ;;  %p1444_p6 = scmp.ne.s32.totalorder (!%p1443_p10), %s1436_s20, 0 }
  0x4b   : > { %154 = sbr.rel (%p1443_p10) target bundleno = 1683 (0x693), region = 28  ;;  %s798_s5 = sshll.u32 (!%p1443_p10), %s1282_s29, 2 }
  0x4c   : > { %s157_s7 = scalar_lea.sflag (!%p1443_p10), [#allocation3], %s1282_s29  ;;  %s1288_s30 = scalar_lea.vmem (!%p1443_p10), [#allocation2], %s798_s5 }
  0x52   : > { %1079 = dma.done.wait (%p1444_p6), %s157_s7, 64  }
  0x53   : > { %1081 = vsyncadd (%p1444_p6), %s157_s7, 4294967232  ;;  %s166_s3 = scalar_lea.sflag [#allocation6], %s1282_s29  ;;  %s168_s26 = scalar_lea.vmem [#allocation5], %s1282_s29 }
  0x54   : > { %1083 = dma.done.wait (%p1444_p6), %s166_s3, 16  }
  0x55   : > { %1085 = vsyncadd (%p1444_p6), %s166_s3, 4294967280  ;;  %v1108_v0 = vmov 0.0   ;;  %vm1109_vm0 = vmmov 0   ;;  %v195_v1 = vld [vmem:[%s1288_s30] sm:$0xf]  ;;  %s1110_s6 = smov 96  }
  0x56   : > { %839 = vmatprep.subr.bf16.mxu0 %v1108_v0  ;;  %841 = vmatprep.mubr.msk.bf16.mxu0 %vm1109_vm0, %v1108_v0  ;;  %v801_v2 = vcombine.low %v195_v1, %v195_v1  ;;  %vm207_vm1 = vcmask 64512   ;;  %s1111_s20 = smov 64   ;;  %v1313_v5 = vld [vmem:[%s1288_s30] ss:$0 sps:$4 sm:$0xff]   ;;  %s1112_s8 = smov 88   ;;  %vm271_vm2 = vcmask 1043456  }
  0x57   : > { %845 = vmatprep.subr.bf16.mxu1 %v1108_v0  ;;  %847 = vmatprep.mubr.msk.bf16.mxu1 %vm1109_vm0, %v1108_v0  ;;  %v1316_v6 = vld [vmem:[%s168_s26] ss:$0 sm:$0xff]  ;;  %s1113_s28 = smov 72   ;;  %s1114_s4 = smov 120   ;;  %vm316_vm3 = vcmask 60416   ;;  %vm439_vm4 = vcmask 126016  }
  0x58   : > { %205 = vrot.lane.b32.xlu0 %v801_v2, %s1110_s6  ;;  %266 = vrot.lane.b32.xlu1 %v801_v2, %s1111_s20  ;;  %v1321_v13 = vld [vmem:[%s1288_s30] ss:$0 sps:$4 sm:$0xff]   ;;  %s1115_s14 = smov 80   ;;  %s1116_s16 = smov 112   ;;  %vm562_vm5 = vcmask 191616   ;;  %vm685_vm6 = vcmask 257216  }
  0x59   : > { %v1329_v21 = vld [vmem:[%s1288_s30] ss:$0 sps:$4 sm:$0xff]   ;;  %s1117_s17 = smov 104   ;;  %s1351_s19 = scalar_lea.vmem [#allocation7], %s798_s5 }
  0x5a   : > { %s1118_s23 = smov 56   ;;  %s1119_s24 = smov 48  }
  0x5b   : > { %s1120_s25 = smov 40   ;;  %s1121_s27 = smov 8  }
  0x5c   : > { %324 = vrot.lane.b32.xlu1 %v1313_v5, %s1112_s8  ;;  %s1122_s5 = smov 16   ;;  %s1123_s7 = smov 24  }
  0x5d   : > { %s817_s30 = sshll.u32 %s1161_s13, 6  ;;  %s701_s3 = sshll.u32 %s1351_s19, 4  ;;  %s1387_s3 = int_to_ptr.vmem [resolvable:$true] %s701_s3 }
  0x5e   : > { %s1385_s20 = scalar_lea.hbm %s1432_s2, %s817_s30  ;;  %s688_s8 = scalar_lea.sflag [#allocation4], %s1282_s29 }
  0x5f   : > { %p1445_p3 = scmp.ne.s32.totalorder %s1437_s21, 0  ;;  %s1124_s13 = smov [#allocation7]  }
  0xca   : > { %v206_v3 = vpop.permute.xlu0 %205  ;;  %v267_v14 = vpop.permute.xlu1 %266 }
  0xcb   : > { %v212_v4 = vsel %vm207_vm1, %v206_v3, 0  ;;  %v273_v15 = vsel %vm271_vm2, %v267_v14, 0 }
  0xcc   : > { %840 = vmatpush3.bf16.xpose.msra.mxu0 %v212_v4  ;;  %846 = vmatpush3.bf16.msra.mxu1 %v273_v15 }
  0xcd   : > { %857 = vmatprep.subr.bf16.mxu0 %v1108_v0  ;;  %851 = vmatprep.subr.bf16.mxu1 %v1108_v0 }
  0xce   : > { %v325_v22 = vpop.permute.xlu1 %324 }
  0xcf   : > { %v330_v28 = vsel %vm207_vm1, %v325_v22, 0 }
  0xd3   : > { %842 = vmatmul.mubr.msk.bf16.vlgmr.msra.gmra.mrb[0].mxu0 %vm207_vm1, %v195_v1 }
  0xd4   : > { %859 = vmatprep.mubr.msk.bf16.mxu0 %vm1109_vm0, %v1108_v0 }
 0x1a6   : > { %v248_v7 = vpop.f32.mrb[0].mxu0 }
 0x1a7   : > { %v249_v8 = vadd.f32 %v1316_v6, %v248_v7  ;;  %v843_v9 = vpop.f32.mrb[1].mxu0 }
 0x1a8   : > { %v251_v10 = vpop.f32.mrb[2].mxu0 }
 0x1a9   : > { %v844_v11 = vpop.f32.mrb[3].mxu0  ;;  %v254_v12 = vsel %vm207_vm1, %v249_v8, -inf }
 0x1aa   : > { %255 = vmax.xlane.f32.xlu0 %v254_v12 }
 0x1c0   : > { %570 = vrot.lane.b32.xlu0 %v1321_v13, %s1113_s28  ;;  %s1034_s28 = scalar_lea.vmem %s1387_s3, 64 }
 0x1c1   : > { %p1035_p13 = scmp.ne.s32.totalorder %s1387_s3, %s1034_s28 }
 0x1c3   : > { %p1036_p7 = pnand %p1035_p13, %p1445_p3 }
 0x1c5   : > { %p1037_p5 = pneg %p1036_p7 }
 0x237   : > { %v256_v16 = vpop.xlane.xlu0 %255 }
 0x238   : > { %v257_v17 = vsub.f32 %v249_v8, %v256_v16 }
 0x23a   : > { %v258_v18 = vmul.f32 1.442695, %v257_v17 }
 0x23b   : > { %v571_v31 = vpop.permute.xlu0 %570 }
 0x23c   : > { %958 = vpow2.f32 %v258_v18  ;;  %v576_v33 = vsel %vm207_vm1, %v571_v31, 0 }
 0x246   : > { %v959_v19 = vpop.eup %958 }
 0x247   : > { %v260_v20 = vsel %vm207_vm1, %v959_v19, 0.0 }
 0x248   : > { %261 = vadd.xlane.f32.xlu1 %v260_v20 }
 0x259   : > { %322 = vrot.lane.b32.xlu1 %v1313_v5, %s1114_s4  ;;  %s1038_s4 = sshll.u32 %s1124_s13, 4  ;;  %s1039_s4 = int_to_ptr.vmem [resolvable:$false] %s1038_s4 }
 0x25a   : > { %p1041_p8 = scmp.lt.s32.totalorder %s1387_s3, %s1039_s4 }
 0x25d   : > { %447 = vrot.lane.b32.xlu1 %v1329_v21, %s1115_s14  ;;  %s1040_s14 = scalar_lea.vmem %s1039_s4, 128 }
 0x25e   : > { %p1042_p9 = scmp.lt.s32.totalorder %s1040_s14, %s1034_s28 }
 0x260   : > { %p1043_p0 = por %p1042_p9, %p1041_p8 }
 0x261   : > { %445 = vrot.lane.b32.xlu1 %v1329_v21, %s1116_s16 }
 0x262   : > { %p1044_p1 = pnand %p1043_p0, %p1037_p5 }
 0x265   : > { %568 = vrot.lane.b32.xlu1 %v1321_v13, %s1117_s17 }
 0x2d5   : > { %v262_v23 = vpop.xlane.xlu1 %261 }
 0x2d6   : > { %960 = vrcp.f32 %v262_v23 }
 0x2d9   : > { %v323_v26 = vpop.permute.xlu1 %322 }
 0x2dd   : > { %v448_v29 = vpop.permute.xlu1 %447 }
 0x2de   : > { %v453_v30 = vsel %vm207_vm1, %v448_v29, 0 }
 0x2e0   : > { %v961_v24 = vpop.eup %960 }
 0x2e1   : > { %v264_v25 = vmul.f32 %v961_v24, %v959_v19  ;;  %v446_v32 = vpop.permute.xlu1 %445 }
 0x2e3   : > { %v265_v27 = vpack.c.bf16 %v264_v25, %v264_v25 }
 0x2e5   : > { %848 = vmatmul.mubr.msk.bf16.vlgmr.msra.gmra.mrb[0].mxu1 %vm207_vm1, %v265_v27  ;;  %v569_v34 = vpop.permute.xlu1 %568 }
 0x2e6   : > { %852 = vmatpush3.bf16.xpose.msra.mxu1 %v330_v28  ;;  %853 = vmatprep.mubr.msk.bf16.mxu1 %vm1109_vm0, %v1108_v0 }
 0x2e7   : > { %863 = vmatprep.subr.bf16.mxu1 %v1108_v0 }
 0x2ed   : > { %854 = vmatmul.mubr.msk.bf16.vlgmr.msra.gmra.mrb[4].mxu1 %vm207_vm1, %v323_v26 }
 0x2ee   : > { %864 = vmatpush3.bf16.xpose.msra.mxu1 %v453_v30  ;;  %865 = vmatprep.mubr.msk.bf16.mxu1 %vm1109_vm0, %v1108_v0 }
 0x2ef   : > { %875 = vmatprep.subr.bf16.mxu1 %v1108_v0 }
 0x2f5   : > { %866 = vmatmul.mubr.msk.bf16.vlgmr.msra.gmra.mrb[8].mxu1 %vm207_vm1, %v446_v32 }
 0x2f6   : > { %876 = vmatpush3.bf16.xpose.msra.mxu1 %v576_v33  ;;  %877 = vmatprep.mubr.msk.bf16.mxu1 %vm1109_vm0, %v1108_v0 }
 0x2fd   : > { %878 = vmatmul.mubr.msk.bf16.vlgmr.msra.gmra.mrb[12].mxu1 %vm207_vm1, %v569_v34 }
 0x3b8   : > { %v309_v35 = vpop.f32.mrb[0].mxu1 }
 0x3b9   : > { %v315_v36 = vpack.c.bf16 %v309_v35, %v309_v35  ;;  %v849_v37 = vpop.f32.mrb[1].mxu1 }
 0x3ba   : > { %v312_v38 = vpop.f32.mrb[2].mxu1 }
 0x3bb   : > { %317 = vst.msk [vmem:[%s1351_s19] sm:$0xf] %vm316_vm3, %v315_v36  ;;  %v850_v39 = vpop.f32.mrb[3].mxu1 }
 0x3c0   : > { %v366_v40 = vpop.f32.mrb[4].mxu1 }
 0x3c1   : > { %v367_v41 = vadd.f32 %v1316_v6, %v366_v40  ;;  %v855_v42 = vpop.f32.mrb[5].mxu1 }
 0x3c2   : > { %v369_v43 = vpop.f32.mrb[6].mxu1 }
 0x3c3   : > { %v856_v44 = vpop.f32.mrb[7].mxu1  ;;  %v372_v45 = vsel %vm207_vm1, %v367_v41, -inf }
 0x3c4   : > { %373 = vmax.xlane.f32.xlu1 %v372_v45 }
 0x3c8   : > { %v489_v46 = vpop.f32.mrb[8].mxu1 }
 0x3c9   : > { %v490_v47 = vadd.f32 %v1316_v6, %v489_v46  ;;  %v867_v48 = vpop.f32.mrb[9].mxu1 }
 0x3ca   : > { %v492_v49 = vpop.f32.mrb[10].mxu1 }
 0x3cb   : > { %v495_v50 = vsel %vm207_vm1, %v490_v47, -inf  ;;  %v868_v51 = vpop.f32.mrb[11].mxu1 }
 0x3cc   : > { %496 = vmax.xlane.f32.xlu0 %v495_v50 }
 0x3d0   : > { %v612_v52 = vpop.f32.mrb[12].mxu1 }
 0x3d1   : > { %v613_v53 = vadd.f32 %v1316_v6, %v612_v52  ;;  %v879_v54 = vpop.f32.mrb[13].mxu1 }
 0x3d2   : > { %v615_v55 = vpop.f32.mrb[14].mxu1 }
 0x3d3   : > { %v618_v56 = vsel %vm207_vm1, %v613_v53, -inf  ;;  %v880_v57 = vpop.f32.mrb[15].mxu1 }
 0x3d4   : > { %619 = vmax.xlane.f32.xlu1 %v618_v56 }
 0x451   : > { %v374_v58 = vpop.xlane.xlu1 %373 }
 0x452   : > { %v375_v59 = vsub.f32 %v367_v41, %v374_v58 }
 0x454   : > { %v376_v60 = vmul.f32 1.442695, %v375_v59 }
 0x456   : > { %962 = vpow2.f32 %v376_v60 }
 0x459   : > { %v497_v6 = vpop.xlane.xlu0 %496 }
 0x45a   : > { %v498_v7 = vsub.f32 %v490_v47, %v497_v6 }
 0x45c   : > { %v499_v8 = vmul.f32 1.442695, %v498_v7 }
 0x460   : > { %v963_v61 = vpop.eup %962 }
 0x461   : > { %v620_v62 = vpop.xlane.xlu1 %619  ;;  %v378_v63 = vsel %vm207_vm1, %v963_v61, 0.0 }
 0x462   : > { %v621_v1 = vsub.f32 %v613_v53, %v620_v62  ;;  %379 = vadd.xlane.f32.xlu1 %v378_v63 }
 0x464   : > { %v622_v2 = vmul.f32 1.442695, %v621_v1 }
 0x466   : > { %964 = vpow2.f32 %v622_v2 }
 0x467   : > { %966 = vpow2.f32 %v499_v8 }
 0x470   : > { %v965_v3 = vpop.eup %964 }
 0x471   : > { %v624_v4 = vsel %vm207_vm1, %v965_v3, 0.0  ;;  %v967_v9 = vpop.eup %966 }
 0x472   : > { %625 = vadd.xlane.f32.xlu0 %v624_v4  ;;  %v501_v10 = vsel %vm207_vm1, %v967_v9, 0.0 }
 0x473   : > { %384 = vrot.lane.b32.xlu1 %v1313_v5, %s1118_s23 }
 0x488   : > { %507 = vrot.lane.b32.xlu0 %v1329_v21, %s1119_s24 }
 0x497   : > { %502 = vadd.xlane.f32.xlu1 %v501_v10 }
 0x4a8   : > { %630 = vrot.lane.b32.xlu1 %v1321_v13, %s1120_s25 }
 0x4ef   : > { %v380_v11 = vpop.xlane.xlu1 %379 }
 0x4f0   : > { %968 = vrcp.f32 %v380_v11 }
 0x4f3   : > { %v385_v12 = vpop.permute.xlu1 %384 }
 0x4f4   : > { %v390_v14 = vsel %vm271_vm2, %v385_v12, 0 }
 0x4f5   : > { %858 = vmatpush3.bf16.msra.mxu0 %v390_v14 }
 0x4f6   : > { %869 = vmatprep.subr.bf16.mxu0 %v1108_v0 }
 0x4fa   : > { %v969_v5 = vpop.eup %968 }
 0x4fb   : > { %v382_v15 = vmul.f32 %v969_v5, %v963_v61 }
 0x4fd   : > { %v383_v16 = vpack.c.bf16 %v382_v15, %v382_v15 }
 0x4ff   : > { %860 = vmatmul.mubr.msk.bf16.vlgmr.msra.gmra.mrb[4].mxu0 %vm207_vm1, %v383_v16  ;;  %v626_v17 = vpop.xlane.xlu0 %625 }
 0x500   : > { %871 = vmatprep.mubr.msk.bf16.mxu0 %vm1109_vm0, %v1108_v0 }
 0x503   : > { %v508_v18 = vpop.permute.xlu0 %507 }
 0x504   : > { %v513_v13 = vsel %vm271_vm2, %v508_v18, 0 }
 0x505   : > { %870 = vmatpush3.bf16.msra.mxu0 %v513_v13 }
 0x506   : > { %881 = vmatprep.subr.bf16.mxu0 %v1108_v0 }
 0x524   : > { %v503_v19 = vpop.xlane.xlu1 %502 }
 0x525   : > { %970 = vrcp.f32 %v503_v19 }
 0x526   : > { %972 = vrcp.f32 %v626_v17 }
 0x528   : > { %v631_v21 = vpop.permute.xlu1 %630 }
 0x529   : > { %v636_v23 = vsel %vm271_vm2, %v631_v21, 0 }
 0x52f   : > { %v971_v20 = vpop.eup %970 }
 0x530   : > { %v505_v22 = vmul.f32 %v971_v20, %v967_v9  ;;  %v973_v25 = vpop.eup %972 }
 0x531   : > { %v628_v26 = vmul.f32 %v973_v25, %v965_v3 }
 0x532   : > { %v506_v24 = vpack.c.bf16 %v505_v22, %v505_v22 }
 0x533   : > { %v629_v27 = vpack.c.bf16 %v628_v26, %v628_v26 }
 0x534   : > { %872 = vmatmul.mubr.msk.bf16.vlgmr.msra.gmra.mrb[8].mxu0 %vm207_vm1, %v506_v24 }
 0x535   : > { %882 = vmatpush3.bf16.msra.mxu0 %v636_v23  ;;  %883 = vmatprep.mubr.msk.bf16.mxu0 %vm1109_vm0, %v1108_v0 }
 0x53c   : > { %884 = vmatmul.mubr.msk.bf16.vlgmr.msra.gmra.mrb[12].mxu0 %vm207_vm1, %v629_v27 }
 0x5d2   : > { %v426_v28 = vpop.f32.mrb[4].mxu0 }
 0x5d3   : > { %v820_v29 = vpack.c.bf16 %v426_v28, %v426_v28  ;;  %v861_v30 = vpop.f32.mrb[5].mxu0 }
 0x5d4   : > { %v429_v31 = vpop.f32.mrb[6].mxu0 }
 0x5d5   : > { %v862_v32 = vpop.f32.mrb[7].mxu0  ;;  %436 = vrot.lane.b32.xlu1 %v820_v29, %s1121_s27 }
 0x607   : > { %v549_v33 = vpop.f32.mrb[8].mxu0 }
 0x608   : > { %v821_v34 = vpack.c.bf16 %v549_v33, %v549_v33  ;;  %v873_v35 = vpop.f32.mrb[9].mxu0 }
 0x609   : > { %v552_v36 = vpop.f32.mrb[10].mxu0 }
 0x60a   : > { %559 = vrot.lane.b32.xlu0 %v821_v34, %s1122_s5  ;;  %v874_v0 = vpop.f32.mrb[11].mxu0 }
 0x60f   : > { %v672_v37 = vpop.f32.mrb[12].mxu0 }
 0x610   : > { %v822_v38 = vpack.c.bf16 %v672_v37, %v672_v37  ;;  %v885_v39 = vpop.f32.mrb[13].mxu0 }
 0x611   : > { %v675_v40 = vpop.f32.mrb[14].mxu0 }
 0x612   : > { %682 = vrot.lane.b32.xlu1 %v822_v38, %s1123_s7  ;;  %v886_v41 = vpop.f32.mrb[15].mxu0 }
 0x647   : > { %v437_v42 = vpop.permute.xlu1 %436 }
 0x648   : > { %440 = vst.msk [vmem:[%s1351_s19] sm:$0xf] %vm439_vm4, %v437_v42 }
 0x67c   : > { %v560_v43 = vpop.permute.xlu0 %559 }
 0x67d   : > { %563 = vst.msk [vmem:[%s1351_s19] sm:$0xf] %vm562_vm5, %v560_v43 }
 0x684   : > { %v683_v44 = vpop.permute.xlu1 %682 }
 0x685   : > { %686 = vst.msk [vmem:[%s1351_s19] sm:$0xf] %vm685_vm6, %v683_v44 }
 0x686   : > { %1047 = shalt.err (!%p1044_p1)
}
 0x687   : > { %s1048_s29 = scalar_lea.hbm %s1385_s20, 64  ;;  %s1052_s19 = scalar_lea.hbm %s1432_s2, 128 }
 0x688   : > { %p1049_p11 = scmp.ne.s32.totalorder %s1385_s20, %s1048_s29  ;;  %p1053_p4 = scmp.lt.u32.totalorder %s1385_s20, %s1432_s2 }
 0x689   : > { %p1054_p10 = scmp.lt.u32.totalorder %s1052_s19, %s1048_s29  ;;  %p1056_p13 = scmp.lt.u32.totalorder %s1048_s29, %s1385_s20 }
 0x68a   : > { %p1050_p12 = pnand %p1049_p11, %p1445_p3 }
 0x68b   : > { %p1055_p6 = por %p1054_p10, %p1053_p4 }
 0x68c   : > { %p1051_p2 = pneg %p1050_p12 }
 0x68d   : > { %p1057_p7 = por %p1056_p13, %p1055_p6 }
 0x68f   : > { %p1058_p5 = pnand %p1057_p7, %p1051_p2 }
 0x691   : > { %1061 = shalt.err (!%p1058_p5)
}
 0x692   : > { %891 = dma.vmem_to_hbm [thread:$0]  (%p1445_p3), %s1387_s3, 64, %s1385_s20, %s688_s8  }
 0x693 PF: > { %s713_s25 = sand.u32 1, %s1092_s9   ;;  %p1446_p8 = scmp.ne.s32.totalorder %s1438_s22, 0 }
 0x694   : > { %p1447_p9 = scmp.ge.s32.totalorder %s1104_s12, 2  ;;  %s714_s27 = scalar_lea.sflag [#allocation4], %s713_s25 }
 0x696   : > { %p901_p0 = pnand %p1447_p9, %p1446_p8 }
 0x698   : > { %1087 = dma.done.wait (!%p901_p0), %s714_s27, 64  }
 0x699   : > { %1089 = vsyncadd (!%p901_p0), %s714_s27, 4294967232  ;;  %p18_p1 = scmp.ge.s32.totalorder %s1165_s15, 4   ;;  %s1448_s9 = smov %s1096_s10 }
 0x69a   : > { %s1449_s10 = smov %s1100_s11  ;;  %s1450_s11 = smov %s1177_s18 }
 0x69b   : > { %s1451_s12 = smov %s1165_s15  ;;  %20 = sbr.rel (!%p18_p1) target bundleno = 7 (0x7), region = 86 }
 0x6a2   :  { %719 = vsyncpa [#allocation3], 1 }
 0x6a3   :  { %721 = vsyncpa [#allocation3 + $0x1], 1 }
 0x6a4   :  { %722 = vsyncpa [#allocation6], 1 }
 0x6a5   :  { %724 = vsyncpa [#allocation6 + $0x1], 1 }
 0x6a6   :  { %725 = vsyncpa [#allocation4], 1 }
 0x6a7   :  { %727 = vsyncpa [#allocation4 + $0x1], 1 }

// kernel: bert_classifier_forward.16
= control target key start
LH: loop header
LB: loop body
LE: loop exit
PB: predicated region body
PF: predicated region fallthrough
CT: control target
= control target key end

     0   :  { %11 = vsyncpa [#allocation3], 0  ;;  %s646_s0 = inlined_call_operand.hbm [shape: bf16[16,64], index: 0, kind: input, shape index: {}]   ;;  %s647_s1 = inlined_call_operand.hbm [shape: bf16[64,32], index: 1, kind: input, shape index: {}]   ;;  %s648_s2 = inlined_call_operand.hbm [shape: f32[1,32], index: 2, kind: input, shape index: {}]   ;;  %s649_s3 = inlined_call_operand.hbm [shape: bf16[16,32], index: 3, kind: input, shape index: {}]   ;;  %s650_s4 = inlined_call_operand.hbm [shape: f32[1,32], index: 4, kind: input, shape index: {}]   ;;  %s651_s5 = inlined_call_operand.hbm [shape: f32[1,32], index: 5, kind: input, shape index: {}]   ;;  %s652_s6 = inlined_call_operand.hbm [shape: bf16[16,32], index: 6, kind: output, shape index: {}]  }
   0x1   :  { %12 = vsyncpa [#allocation6], 0 }
   0x2   :  { %13 = vsyncpa [#allocation9], 0 }
   0x3   :  { %14 = vsyncpa [#allocation12], 0 }
   0x4   :  { %15 = vsyncpa [#allocation4], 0  ;;  %s493_s21 = smov [#allocation5]   ;;  %s494_s23 = smov [#allocation8]  }
   0x5   :  { %s33_s22 = sshll.u32 %s493_s21, 4  ;;  %s55_s24 = sshll.u32 %s494_s23, 4  ;;  %s34_s22 = int_to_ptr.vmem [resolvable:$true] %s33_s22  ;;  %s539_s24 = int_to_ptr.vmem [resolvable:$true] %s55_s24 }
   0x6   :  { %s329_s27 = scalar_lea.hbm %s647_s1, 512 }
   0x7   :  { %p330_p0 = scmp.ne.s32.totalorder %s647_s1, %s329_s27  ;;  %p333_p1 = scmp.lt.u32.totalorder %s329_s27, %s647_s1 }
   0x9   :  { %p335_p2 = pnand %p333_p1, %p330_p0 }
   0xb   :  { %338 = shalt.err (!%p335_p2)
}
   0xc   :  { %s339_s8 = scalar_lea.vmem %s34_s22, 512  ;;  %p344_p4 = scmp.lt.s32.totalorder %s34_s22, %s34_s22 }
   0xd   :  { %p340_p3 = scmp.ne.s32.totalorder %s34_s22, %s339_s8  ;;  %p345_p5 = scmp.lt.s32.totalorder %s339_s8, %s339_s8 }
   0xf   :  { %p346_p6 = por %p345_p5, %p344_p4 }
  0x11   :  { %p347_p7 = pnand %p346_p6, %p340_p3 }
  0x13   :  { %350 = shalt.err (!%p347_p7)
}
  0x14   :  { %s495_s9 = smov 64   ;;  %s496_s10 = smov 4  }
  0x15   :  { %39 = dma.hbm_to_vmem [thread:$0]  %s647_s1, 512, %s34_s22, [#allocation6], %s495_s9, %s495_s9, %s496_s10  }
  0x16   :  { %s351_s15 = scalar_lea.hbm %s649_s3, 128 }
  0x17   :  { %p352_p8 = scmp.ne.s32.totalorder %s649_s3, %s351_s15  ;;  %p355_p9 = scmp.lt.u32.totalorder %s351_s15, %s649_s3 }
  0x19   :  { %p357_p10 = pnand %p355_p9, %p352_p8 }
  0x1b   :  { %360 = shalt.err (!%p357_p10)
}
  0x1c   :  { %s361_s20 = scalar_lea.vmem %s539_s24, 128  ;;  %p366_p12 = scmp.lt.s32.totalorder %s539_s24, %s539_s24 }
  0x1d   :  { %p362_p11 = scmp.ne.s32.totalorder %s539_s24, %s361_s20  ;;  %p367_p13 = scmp.lt.s32.totalorder %s361_s20, %s361_s20 }
  0x1f   :  { %p368_p0 = por %p367_p13, %p366_p12 }
  0x21   :  { %p369_p1 = pnand %p368_p0, %p362_p11 }
  0x23   :  { %372 = shalt.err (!%p369_p1)
}
  0x24   :  { %61 = dma.hbm_to_vmem [thread:$0]  %s649_s3, 128, %s539_s24, [#allocation9], %s495_s9, %s495_s9, %s496_s10  }
  0x25   :  { %s497_s22 = smov [#allocation2]   ;;  %s498_s25 = smov [#allocation7]  }
  0x26   :  { %s21_s23 = sshll.u32 %s497_s22, 4  ;;  %s46_s26 = sshll.u32 %s498_s25, 4  ;;  %s22_s23 = int_to_ptr.vmem [resolvable:$true] %s21_s23  ;;  %s47_s26 = int_to_ptr.vmem [resolvable:$true] %s46_s26 }
  0x27   :  { %s373_s29 = scalar_lea.hbm %s646_s0, 128 }
  0x28   :  { %p374_p2 = scmp.ne.s32.totalorder %s646_s0, %s373_s29  ;;  %p377_p3 = scmp.lt.u32.totalorder %s373_s29, %s646_s0 }
  0x2a   :  { %p379_p4 = pnand %p377_p3, %p374_p2 }
  0x2c   :  { %382 = shalt.err (!%p379_p4)
}
  0x2d   :  { %s383_s3 = scalar_lea.vmem %s22_s23, 128  ;;  %p388_p6 = scmp.lt.s32.totalorder %s22_s23, %s22_s23 }
  0x2e   :  { %p384_p5 = scmp.ne.s32.totalorder %s22_s23, %s383_s3  ;;  %p389_p7 = scmp.lt.s32.totalorder %s383_s3, %s383_s3 }
  0x30   :  { %p390_p8 = por %p389_p7, %p388_p6 }
  0x32   :  { %p391_p9 = pnand %p390_p8, %p384_p5 }
  0x34   :  { %394 = shalt.err (!%p391_p9)
}
  0x35   :  { %27 = dma.hbm_to_vmem [thread:$0]  %s646_s0, 128, %s22_s23, [#allocation3], %s495_s9, %s495_s9, %s496_s10  }
  0x36   :  { %s395_s15 = scalar_lea.hbm %s648_s2, 16 }
  0x37   :  { %p396_p10 = scmp.ne.s32.totalorder %s648_s2, %s395_s15  ;;  %p399_p11 = scmp.lt.u32.totalorder %s395_s15, %s648_s2 }
  0x39   :  { %p401_p12 = pnand %p399_p11, %p396_p10 }
  0x3b   :  { %404 = shalt.err (!%p401_p12)
}
  0x3c   :  { %s405_s20 = scalar_lea.vmem %s47_s26, 16  ;;  %s409_s1 = scalar_lea.vmem %s47_s26, 32 }
  0x3d   :  { %p406_p13 = scmp.ne.s32.totalorder %s47_s26, %s405_s20  ;;  %p410_p0 = scmp.lt.s32.totalorder %s47_s26, %s47_s26 }
  0x3e   :  { %p411_p1 = scmp.lt.s32.totalorder %s409_s1, %s405_s20 }
  0x40   :  { %p412_p2 = por %p411_p1, %p410_p0 }
  0x42   :  { %p413_p3 = pnand %p412_p2, %p406_p13 }
  0x44   :  { %416 = shalt.err (!%p413_p3)
}
  0x45   :  { %49 = dma.hbm_to_vmem [thread:$0]  %s648_s2, 16, %s47_s26, [#allocation6]  }
  0x46   :  { %s499_s22 = smov [#allocation10]   ;;  %s500_s25 = smov [#allocation11]  }
  0x47   :  { %s68_s23 = sshll.u32 %s499_s22, 4  ;;  %s78_s27 = sshll.u32 %s500_s25, 4  ;;  %s69_s23 = int_to_ptr.vmem [resolvable:$true] %s68_s23  ;;  %s79_s27 = int_to_ptr.vmem [resolvable:$true] %s78_s27 }
  0x48   :  { %s417_s30 = scalar_lea.hbm %s650_s4, 16 }
  0x49   :  { %p418_p4 = scmp.ne.s32.totalorder %s650_s4, %s417_s30  ;;  %p421_p5 = scmp.lt.u32.totalorder %s417_s30, %s650_s4 }
  0x4b   :  { %p423_p6 = pnand %p421_p5, %p418_p4 }
  0x4d   :  { %426 = shalt.err (!%p423_p6)
}
  0x4e   :  { %s427_s2 = scalar_lea.vmem %s69_s23, 16  ;;  %s431_s26 = scalar_lea.vmem %s69_s23, 32 }
  0x4f   :  { %p428_p7 = scmp.ne.s32.totalorder %s69_s23, %s427_s2  ;;  %p432_p8 = scmp.lt.s32.totalorder %s69_s23, %s69_s23 }
  0x50   :  { %p433_p9 = scmp.lt.s32.totalorder %s431_s26, %s427_s2 }
  0x52   :  { %p434_p10 = por %p433_p9, %p432_p8 }
  0x54   :  { %p435_p11 = pnand %p434_p10, %p428_p7 }
  0x56   :  { %438 = shalt.err (!%p435_p11)
}
  0x57   :  { %71 = dma.hbm_to_vmem [thread:$0]  %s650_s4, 16, %s69_s23, [#allocation9]  }
  0x58   :  { %s439_s15 = scalar_lea.hbm %s651_s5, 16 }
  0x59   :  { %p440_p12 = scmp.ne.s32.totalorder %s651_s5, %s439_s15  ;;  %p443_p13 = scmp.lt.u32.totalorder %s439_s15, %s651_s5 }
  0x5b   :  { %p445_p0 = pnand %p443_p13, %p440_p12 }
  0x5d   :  { %448 = shalt.err (!%p445_p0)
}
  0x5e   :  { %s449_s20 = scalar_lea.vmem %s79_s27, 16  ;;  %s453_s1 = scalar_lea.vmem %s79_s27, 32 }
  0x5f   :  { %p450_p1 = scmp.ne.s32.totalorder %s79_s27, %s449_s20  ;;  %p454_p2 = scmp.lt.s32.totalorder %s79_s27, %s79_s27 }
  0x60   :  { %p455_p3 = scmp.lt.s32.totalorder %s453_s1, %s449_s20 }
  0x62   :  { %p456_p4 = por %p455_p3, %p454_p2 }
  0x64   :  { %p457_p5 = pnand %p456_p4, %p450_p1 }
  0x66   :  { %460 = shalt.err (!%p457_p5)
}
  0x67   :  { %81 = dma.hbm_to_vmem [thread:$0]  %s651_s5, 16, %s79_s27, [#allocation12]  }
  0x68   :  { %483 = dma.done.wait [#allocation3], 128  }
  0x69   :  { %484 = vsyncadd [#allocation3], 4294967168 }
  0x6a   :  { %485 = dma.done.wait [#allocation6], 528  }
  0x6b   :  { %486 = vsyncadd [#allocation6], 4294966768 }
  0x6c   :  { %487 = dma.done.wait [#allocation9], 144  }
  0x6d   :  { %488 = vsyncadd [#allocation9], 4294967152 }
  0x6e   :  { %489 = dma.done.wait [#allocation12], 16  }
  0x6f   :  { %490 = vsyncadd [#allocation12], 4294967280  ;;  %v501_v0 = vmov 0.0   ;;  %vm502_vm0 = vmmov 0   ;;  %v320_v1 = vld [vmem:[#allocation5] sm:$0xff]   ;;  %v321_v2 = vld [vmem:[#allocation5 + $0x8] sm:$0xff]  }
  0x70   :  { %297 = vmatprep.subr.bf16.mxu0 %v501_v0  ;;  %305 = vmatprep.mubr.msk.bf16.mxu0 %vm502_vm0, %v501_v0  ;;  %v322_v3 = vld [vmem:[#allocation5 + $0x10] sm:$0xff]   ;;  %v323_v4 = vld [vmem:[#allocation5 + $0x18] sm:$0xff]   ;;  %vm147_vm1 = vcmask 523264   ;;  %v289_v6 = vld [vmem:[#allocation8] sm:$0xff]   ;;  %vm198_vm2 = vcmask 261120   ;;  %vm252_vm3 = vcmask 257024  }
  0x71   :  { %298 = vmatpush3.bf16.msra.mxu0 %v320_v1  ;;  %v324_v5 = vld [vmem:[#allocation2] sm:$0xff]   ;;  %v275_v7 = vld [vmem:[#allocation7] ss:$0 sm:$0xff]  ;;  %v290_v8 = vunpack.c.l.bf16 %v289_v6  ;;  %v291_v12 = vunpack.c.h.bf16 %v289_v6  ;;  %v282_v37 = vld [vmem:[#allocation10] ss:$0 sm:$0xff]  ;;  %s503_s5 = smov [#allocation13]  }
  0x72   :  { %299 = vmatprep.subr.bf16.mxu0 %v501_v0  ;;  %v283_v39 = vld [vmem:[#allocation11] ss:$0 sm:$0xff]  ;;  %s260_s21 = sshll.u32 %s503_s5, 4  ;;  %s261_s21 = int_to_ptr.vmem [resolvable:$true] %s260_s21 }
  0x73   :  { %s461_s22 = scalar_lea.vmem %s261_s21, 128  ;;  %p466_p7 = scmp.lt.s32.totalorder %s261_s21, %s261_s21 }
  0x74   :  { %p462_p6 = scmp.ne.s32.totalorder %s261_s21, %s461_s22  ;;  %p467_p8 = scmp.lt.s32.totalorder %s461_s22, %s461_s22 }
  0x75   :  { %300 = vmatpush3.bf16.msra.mxu0 %v321_v2 }
  0x76   :  { %301 = vmatprep.subr.bf16.mxu0 %v501_v0  ;;  %p468_p9 = por %p467_p8, %p466_p7 }
  0x78   :  { %p469_p10 = pnand %p468_p9, %p462_p6 }
  0x79   :  { %302 = vmatpush3.bf16.msra.mxu0 %v322_v3 }
  0x7a   :  { %303 = vmatprep.subr.bf16.mxu0 %v501_v0 }
  0x7d   :  { %304 = vmatpush3.bf16.msra.mxu0 %v323_v4 }
  0x80   :  { %306 = vmatmul.mubr.msk.bf16.vlgmr.msra.gmra.mrb[0].mxu0 %vm147_vm1, %v324_v5 }
 0x153   :  { %v185_v9 = vpop.f32.mrb[0].mxu0 }
 0x154   :  { %v186_v10 = vadd.f32 %v275_v7, %v185_v9  ;;  %v307_v11 = vpop.f32.mrb[1].mxu0 }
 0x155   :  { %v188_v13 = vpop.f32.mrb[2].mxu0 }
 0x156   :  { %v189_v14 = vadd.f32 %v275_v7, %v188_v13  ;;  %v308_v15 = vpop.f32.mrb[3].mxu0  ;;  %v196_v16 = vadd.f32 %v290_v8, %v186_v10 }
 0x158   :  { %v199_v17 = vsel %vm198_vm2, %v196_v16, 0.0  ;;  %v197_v18 = vadd.f32 %v291_v12, %v189_v14 }
 0x159   :  { %200 = vadd.xlane.f32.xlu0 %v199_v17 }
 0x15a   :  { %v202_v19 = vsel %vm198_vm2, %v197_v18, 0.0 }
 0x15d   :  { %203 = vadd.xlane.f32.xlu0 %v202_v19 }
 0x1e6   :  { %v201_v20 = vpop.xlane.xlu0 %200 }
 0x1e7   :  { %v206_v21 = vmul.f32 0.03125, %v201_v20 }
 0x1e9   :  { %v208_v22 = vsub.f32 %v196_v16, %v206_v21 }
 0x1ea   :  { %v204_v23 = vpop.xlane.xlu0 %203 }
 0x1eb   :  { %v207_v24 = vmul.f32 0.03125, %v204_v23  ;;  %v210_v25 = vmul.f32 %v208_v22, %v208_v22 }
 0x1ed   :  { %v209_v26 = vsub.f32 %v197_v18, %v207_v24  ;;  %v212_v27 = vsel %vm198_vm2, %v210_v25, 0.0 }
 0x1ee   :  { %213 = vadd.xlane.f32.xlu1 %v212_v27 }
 0x1ef   :  { %v211_v28 = vmul.f32 %v209_v26, %v209_v26 }
 0x1f1   :  { %v215_v29 = vsel %vm198_vm2, %v211_v28, 0.0 }
 0x1f2   :  { %216 = vadd.xlane.f32.xlu1 %v215_v29 }
 0x27b   :  { %v214_v30 = vpop.xlane.xlu1 %213 }
 0x27c   :  { %v218_v31 = vmul.f32 0.03125, %v214_v30 }
 0x27e   :  { %v220_v32 = vadd.f32 1e-12, %v218_v31 }
 0x27f   :  { %v217_v33 = vpop.xlane.xlu1 %216 }
 0x280   :  { %325 = vrsqrt.f32 %v220_v32  ;;  %v219_v34 = vmul.f32 0.03125, %v217_v33 }
 0x282   :  { %v221_v35 = vadd.f32 1e-12, %v219_v34 }
 0x284   :  { %327 = vrsqrt.f32 %v221_v35 }
 0x28a   :  { %v326_v36 = vpop.eup %325 }
 0x28b   :  { %v224_v38 = vmul.f32 %v326_v36, %v208_v22 }
 0x28d   :  { %v233_v40 = vmul.f32 %v282_v37, %v224_v38 }
 0x28e   :  { %v328_v41 = vpop.eup %327 }
 0x28f   :  { %v225_v42 = vmul.f32 %v328_v41, %v209_v26  ;;  %v242_v43 = vadd.f32 %v283_v39, %v233_v40 }
 0x291   :  { %v234_v44 = vmul.f32 %v282_v37, %v225_v42  ;;  %v286_v45 = vpack.c.bf16 %v242_v43, %v242_v43 }
 0x293   :  { %v243_v46 = vadd.f32 %v283_v39, %v234_v44  ;;  %253 = vst.msk [vmem:[#allocation13] sm:$0xf] %vm252_vm3, %v286_v45 }
 0x295   :  { %v287_v47 = vpack.c.bf16 %v243_v46, %v243_v46 }
 0x297   :  { %254 = vst.msk [vmem:[#allocation13 + $0x4] sm:$0xf] %vm252_vm3, %v287_v47 }
 0x298   :  { %472 = shalt.err (!%p469_p10)
}
 0x299   :  { %s473_s27 = scalar_lea.hbm %s652_s6, 128 }
 0x29a   :  { %p474_p11 = scmp.ne.s32.totalorder %s652_s6, %s473_s27  ;;  %p477_p12 = scmp.lt.u32.totalorder %s473_s27, %s652_s6 }
 0x29c   :  { %p479_p13 = pnand %p477_p12, %p474_p11 }
 0x29e   :  { %482 = shalt.err (!%p479_p13)
}
 0x29f   :  { %266 = dma.vmem_to_hbm [thread:$0]  %s261_s21, 128, %s652_s6, [#allocation4], %s495_s9, %s495_s9, %s496_s10  }
 0x2a0   :  { %491 = dma.done.wait [#allocation4], 128  }
 0x2a1   :  { %492 = vsyncadd [#allocation4], 4294967168 }
 0x2a2   :  { %270 = vsyncpa [#allocation3], 1 }
 0x2a3   :  { %271 = vsyncpa [#allocation6], 1 }
 0x2a4   :  { %272 = vsyncpa [#allocation9], 1 }
 0x2a5   :  { %273 = vsyncpa [#allocation12], 1 }
 0x2a6   :  { %274 = vsyncpa [#allocation4], 1 }

// kernel: bert_classifier_forward.15
= control target key start
LH: loop header
LB: loop body
LE: loop exit
PB: predicated region body
PF: predicated region fallthrough
CT: control target
= control target key end

     0   :  { %8 = vsyncpa [#allocation3], 0  ;;  %s398_s0 = inlined_call_operand.hbm [shape: bf16[16,32], index: 0, kind: input, shape index: {}]   ;;  %s399_s1 = inlined_call_operand.hbm [shape: bf16[32,64], index: 1, kind: input, shape index: {}]   ;;  %s400_s2 = inlined_call_operand.hbm [shape: f32[1,64], index: 2, kind: input, shape index: {}]   ;;  %s401_s3 = inlined_call_operand.hbm [shape: bf16[16,64], index: 3, kind: output, shape index: {}]  }
   0x1   :  { %9 = vsyncpa [#allocation6], 0 }
   0x2   :  { %10 = vsyncpa [#allocation4], 0  ;;  %s306_s12 = smov [#allocation5]   ;;  %s307_s14 = smov [#allocation2]  }
   0x3   :  { %s28_s13 = sshll.u32 %s306_s12, 4  ;;  %s16_s15 = sshll.u32 %s307_s14, 4  ;;  %s29_s13 = int_to_ptr.vmem [resolvable:$true] %s28_s13  ;;  %s334_s15 = int_to_ptr.vmem [resolvable:$true] %s16_s15 }
   0x4   :  { %s212_s18 = scalar_lea.hbm %s399_s1, 256 }
   0x5   :  { %p213_p0 = scmp.ne.s32.totalorder %s399_s1, %s212_s18  ;;  %p216_p1 = scmp.lt.u32.totalorder %s212_s18, %s399_s1 }
   0x7   :  { %p218_p2 = pnand %p216_p1, %p213_p0 }
   0x9   :  { %221 = shalt.err (!%p218_p2)
}
   0xa   :  { %s222_s23 = scalar_lea.vmem %s29_s13, 256  ;;  %p227_p4 = scmp.lt.s32.totalorder %s29_s13, %s29_s13 }
   0xb   :  { %p223_p3 = scmp.ne.s32.totalorder %s29_s13, %s222_s23  ;;  %p228_p5 = scmp.lt.s32.totalorder %s222_s23, %s222_s23 }
   0xd   :  { %p229_p6 = por %p228_p5, %p227_p4 }
   0xf   :  { %p230_p7 = pnand %p229_p6, %p223_p3 }
  0x11   :  { %233 = shalt.err (!%p230_p7)
}
  0x12   :  { %s308_s24 = smov 64   ;;  %s309_s25 = smov 4  }
  0x13   :  { %34 = dma.hbm_to_vmem [thread:$0]  %s399_s1, 256, %s29_s13, [#allocation6], %s308_s24, %s308_s24, %s309_s25  }
  0x14   :  { %s234_s30 = scalar_lea.hbm %s398_s0, 128 }
  0x15   :  { %p235_p8 = scmp.ne.s32.totalorder %s398_s0, %s234_s30  ;;  %p238_p9 = scmp.lt.u32.totalorder %s234_s30, %s398_s0 }
  0x17   :  { %p240_p10 = pnand %p238_p9, %p235_p8 }
  0x19   :  { %243 = shalt.err (!%p240_p10)
}
  0x1a   :  { %s244_s8 = scalar_lea.vmem %s334_s15, 128  ;;  %p249_p12 = scmp.lt.s32.totalorder %s334_s15, %s334_s15 }
  0x1b   :  { %p245_p11 = scmp.ne.s32.totalorder %s334_s15, %s244_s8  ;;  %p250_p13 = scmp.lt.s32.totalorder %s244_s8, %s244_s8 }
  0x1d   :  { %p251_p0 = por %p250_p13, %p249_p12 }
  0x1f   :  { %p252_p1 = pnand %p251_p0, %p245_p11 }
  0x21   :  { %255 = shalt.err (!%p252_p1)
}
  0x22   :  { %22 = dma.hbm_to_vmem [thread:$0]  %s398_s0, 128, %s334_s15, [#allocation3], %s308_s24, %s308_s24, %s309_s25  }
  0x23   :  { %s310_s10 = smov [#allocation7]   ;;  %s256_s14 = scalar_lea.hbm %s400_s2, 16 }
  0x24   :  { %s41_s11 = sshll.u32 %s310_s10, 4  ;;  %p257_p2 = scmp.ne.s32.totalorder %s400_s2, %s256_s14  ;;  %s42_s11 = int_to_ptr.vmem [resolvable:$true] %s41_s11 }
  0x25   :  { %p260_p3 = scmp.lt.u32.totalorder %s256_s14, %s400_s2 }
  0x27   :  { %p262_p4 = pnand %p260_p3, %p257_p2 }
  0x29   :  { %265 = shalt.err (!%p262_p4)
}
  0x2a   :  { %s266_s20 = scalar_lea.vmem %s42_s11, 16  ;;  %s270_s0 = scalar_lea.vmem %s42_s11, 32 }
  0x2b   :  { %p267_p5 = scmp.ne.s32.totalorder %s42_s11, %s266_s20  ;;  %p271_p6 = scmp.lt.s32.totalorder %s42_s11, %s42_s11 }
  0x2c   :  { %p272_p7 = scmp.lt.s32.totalorder %s270_s0, %s266_s20 }
  0x2e   :  { %p273_p8 = por %p272_p7, %p271_p6 }
  0x30   :  { %p274_p9 = pnand %p273_p8, %p267_p5 }
  0x32   :  { %277 = shalt.err (!%p274_p9)
}
  0x33   :  { %44 = dma.hbm_to_vmem [thread:$0]  %s400_s2, 16, %s42_s11, [#allocation6]  }
  0x34   :  { %300 = dma.done.wait [#allocation3], 128  }
  0x35   :  { %301 = vsyncadd [#allocation3], 4294967168 }
  0x36   :  { %302 = dma.done.wait [#allocation6], 272  }
  0x37   :  { %303 = vsyncadd [#allocation6], 4294967024  ;;  %v311_v0 = vmov 0.0   ;;  %vm312_vm0 = vmmov 0   ;;  %v205_v1 = vld [vmem:[#allocation5] sm:$0xff]   ;;  %v206_v2 = vld [vmem:[#allocation5 + $0x8] sm:$0xff]  }
  0x38   :  { %189 = vmatprep.subr.bf16.mxu0 %v311_v0  ;;  %193 = vmatprep.mubr.msk.bf16.mxu0 %vm312_vm0, %v311_v0  ;;  %v207_v3 = vld [vmem:[#allocation2] sm:$0xff]   ;;  %vm85_vm1 = vcmask 261120   ;;  %v177_v4 = vld [vmem:[#allocation7] ss:$0 sm:$0xff]  ;;  %vm156_vm2 = vcmask 519168   ;;  %s313_s2 = smov [#allocation8]  }
  0x39   :  { %190 = vmatpush3.bf16.msra.mxu0 %v205_v1  ;;  %s164_s22 = sshll.u32 %s313_s2, 4  ;;  %s165_s22 = int_to_ptr.vmem [resolvable:$true] %s164_s22 }
  0x3a   :  { %191 = vmatprep.subr.bf16.mxu0 %v311_v0  ;;  %s278_s23 = scalar_lea.vmem %s165_s22, 128  ;;  %p283_p11 = scmp.lt.s32.totalorder %s165_s22, %s165_s22 }
  0x3b   :  { %p279_p10 = scmp.ne.s32.totalorder %s165_s22, %s278_s23  ;;  %p284_p12 = scmp.lt.s32.totalorder %s278_s23, %s278_s23 }
  0x3d   :  { %192 = vmatpush3.bf16.msra.mxu0 %v206_v2  ;;  %p285_p13 = por %p284_p12, %p283_p11 }
  0x3f   :  { %p286_p0 = pnand %p285_p13, %p279_p10 }
  0x40   :  { %194 = vmatmul.mubr.msk.bf16.vlgmr.msra.gmra.mrb[0].mxu0 %vm85_vm1, %v207_v3 }
 0x113   :  { %v123_v5 = vpop.f32.mrb[0].mxu0 }
 0x114   :  { %v124_v6 = vadd.f32 %v177_v4, %v123_v5  ;;  %v195_v7 = vpop.f32.mrb[1].mxu0 }
 0x115   :  { %v126_v8 = vpop.f32.mrb[2].mxu0 }
 0x116   :  { %v132_v9 = vmul.f32 0.044715, %v124_v6  ;;  %v127_v10 = vadd.f32 %v177_v4, %v126_v8  ;;  %v196_v11 = vpop.f32.mrb[3].mxu0  ;;  %v130_v22 = vmul.f32 0.5, %v124_v6 }
 0x118   :  { %v134_v12 = vmul.f32 %v132_v9, %v124_v6  ;;  %v133_v13 = vmul.f32 0.044715, %v127_v10  ;;  %v131_v25 = vmul.f32 0.5, %v127_v10 }
 0x11a   :  { %v136_v14 = vmul.f32 %v134_v12, %v124_v6  ;;  %v135_v15 = vmul.f32 %v133_v13, %v127_v10 }
 0x11c   :  { %v138_v16 = vadd.f32 %v136_v14, %v124_v6  ;;  %v137_v17 = vmul.f32 %v135_v15, %v127_v10 }
 0x11e   :  { %v140_v18 = vmul.f32 0.7978846, %v138_v16  ;;  %v139_v19 = vadd.f32 %v137_v17, %v127_v10 }
 0x120   :  { %v141_v20 = vmul.f32 0.7978846, %v139_v19  ;;  %208 = vtanh.f32 %v140_v18 }
 0x122   :  { %210 = vtanh.f32 %v141_v20 }
 0x12a   :  { %v209_v21 = vpop.eup %208 }
 0x12b   :  { %v144_v23 = vadd.f32 1.0, %v209_v21 }
 0x12c   :  { %v211_v24 = vpop.eup %210 }
 0x12d   :  { %v145_v26 = vadd.f32 1.0, %v211_v24  ;;  %v146_v27 = vmul.f32 %v144_v23, %v130_v22 }
 0x12f   :  { %v147_v28 = vmul.f32 %v145_v26, %v131_v25  ;;  %v184_v29 = vpack.c.bf16 %v146_v27, %v146_v27 }
 0x131   :  { %v185_v30 = vpack.c.bf16 %v147_v28, %v147_v28  ;;  %157 = vst.msk [vmem:[#allocation8] sm:$0xf] %vm156_vm2, %v184_v29 }
 0x133   :  { %158 = vst.msk [vmem:[#allocation8 + $0x4] sm:$0xf] %vm156_vm2, %v185_v30 }
 0x134   :  { %289 = shalt.err (!%p286_p0)
}
 0x135   :  { %s290_s28 = scalar_lea.hbm %s401_s3, 128 }
 0x136   :  { %p291_p1 = scmp.ne.s32.totalorder %s401_s3, %s290_s28  ;;  %p294_p2 = scmp.lt.u32.totalorder %s290_s28, %s401_s3 }
 0x138   :  { %p296_p3 = pnand %p294_p2, %p291_p1 }
 0x13a   :  { %299 = shalt.err (!%p296_p3)
}
 0x13b   :  { %170 = dma.vmem_to_hbm [thread:$0]  %s165_s22, 128, %s401_s3, [#allocation4], %s308_s24, %s308_s24, %s309_s25  }
 0x13c   :  { %304 = dma.done.wait [#allocation4], 128  }
 0x13d   :  { %305 = vsyncadd [#allocation4], 4294967168 }
 0x13e   :  { %174 = vsyncpa [#allocation3], 1 }
 0x13f   :  { %175 = vsyncpa [#allocation6], 1 }
 0x140   :  { %176 = vsyncpa [#allocation4], 1 }

</bundles_post_ra>
